<compile_context>
chip_gen: v7x
topology: tpu7x:2x2x1
jax: 0.10.0
libtpu: 0.0.40
codegen_flags: <defaults>
</compile_context>

<pallas_src>
import jax
import jax.numpy as jnp
from jax.experimental import pallas as pl
from jax.experimental.pallas import tpu as pltpu

# ---- config (Falcon-style: new_decoder_architecture=False, multi_query=True,
#              parallel_attn=True, rotary=True, bias=False, dropout=0, eval) ----
B = 2                    # batch
S = 16                   # seq length
H = 64                   # hidden size
NUM_HEADS = 4
HEAD_DIM = H // NUM_HEADS          # 16
QKV_DIM = H + 2 * HEAD_DIM         # multi_query: hidden + 2*head_dim = 96
FFN = 4 * H
EPS = 1e-5
ROPE_THETA = 10000.0
INV_NORM = 1.0 / (HEAD_DIM ** 0.5)
NEG_INF = -1e30


def _rotate_half(x):
    half = x.shape[-1] // 2
    x1 = x[..., :half]
    x2 = x[..., half:]
    return jnp.concatenate((-x2, x1), axis=-1)


def _gelu_exact(x):
    # torch nn.GELU default (erf formulation) -- kept exact for parity with torch.
    return 0.5 * x * (1.0 + jax.lax.erf(x * (1.0 / jnp.sqrt(2.0)).astype(x.dtype)))


# ---------------------------------------------------------------------------
# Pallas kernel: single grid step; batch and heads are folded into rows.
# ---------------------------------------------------------------------------
def falcon_layer_kernel(x_ref, ln_w_ref, ln_b_ref, wq_ref, wk_ref, wv_ref,
                        wd_ref, w_h4h_ref, w_4hh_ref, rot_ref,
                        cos_q_ref, sin_q_ref, cos_k_ref, sin_k_ref,
                        bias_ref, out_ref):
    R = B * S
    x = x_ref[...]                                           # (R, H), rows = b*S+s

    # ---- input LayerNorm ----
    mean = jnp.mean(x, axis=-1, keepdims=True)
    var = jnp.mean((x - mean) ** 2, axis=-1, keepdims=True)
    ln = (x - mean) * jax.lax.rsqrt(var + EPS)
    ln = ln * ln_w_ref[...] + ln_b_ref[...]                  # (R, H)

    rot = rot_ref[...]                                       # (hd, hd)  rotate_half matrix

    # ---- K / V projections (single shared KV head, bias=False) ----
    k = jnp.dot(ln, wk_ref[...], preferred_element_type=jnp.float32)   # (R, hd)
    v = jnp.dot(ln, wv_ref[...], preferred_element_type=jnp.float32)   # (R, hd)
    k = (k * cos_k_ref[...]
         + jnp.dot(k, rot, preferred_element_type=jnp.float32) * sin_k_ref[...])

    # ---- Q projections: all heads stacked on the sublane axis (head-major) ----
    #      (W_q already carries the 1/sqrt(head_dim) attention scale.)
    q = jnp.concatenate(
        [jnp.dot(ln, wq_ref[h], preferred_element_type=jnp.float32)
         for h in range(NUM_HEADS)], axis=0)                 # (NUM_HEADS*R, hd)
    q = (q * cos_q_ref[...]
         + jnp.dot(q, rot, preferred_element_type=jnp.float32) * sin_q_ref[...])

    # ---- multi-query attention: one scores matmul / softmax / PV for all heads ----
    scores = jnp.dot(q, k.T, preferred_element_type=jnp.float32)        # (nh*R, R)
    scores = scores + bias_ref[...]                          # block cross-batch attention
    scores = scores - jnp.max(scores, axis=-1, keepdims=True)
    p = jnp.exp(scores)
    p = p * pl.reciprocal(jnp.sum(p, axis=-1, keepdims=True), approx=True)
    ctx = jnp.dot(p, v, preferred_element_type=jnp.float32)  # (NUM_HEADS*R, hd)

    # ---- merge heads folded into the dense projection: sum_h ctx_h @ Wd[h-block] ----
    attn_out = jnp.dot(ctx[0:R], wd_ref[0], preferred_element_type=jnp.float32)
    for h in range(1, NUM_HEADS):
        attn_out = attn_out + jnp.dot(ctx[h * R:(h + 1) * R], wd_ref[h],
                                      preferred_element_type=jnp.float32)

    # ---- MLP on the same LayerNorm output (parallel_attn=True) ----
    h1 = _gelu_exact(jnp.dot(ln, w_h4h_ref[...], preferred_element_type=jnp.float32))
    mlp_out = jnp.dot(h1, w_4hh_ref[...], preferred_element_type=jnp.float32)

    # dropout probs are 0 / eval mode -> identity.
    # output = residual + attention_output + mlp_output
    out_ref[...] = x + attn_out + mlp_out


def falcon_decoder_layer(x, params, cos, sin):
    Bsz, Sl, Hd = x.shape
    R = Bsz * Sl
    RQ = NUM_HEADS * R

    x2d = x.reshape(R, Hd)

    # ---- host-side weight prep: split fused QKV, per-head dense row blocks ----
    w_qkv = params["w_qkv"]                                           # (H, QKV_DIM)
    wq = w_qkv[:, :Hd].reshape(Hd, NUM_HEADS, HEAD_DIM).transpose(1, 0, 2)  # (nh, H, hd)
    wq = wq * jnp.float32(INV_NORM)            # fold attention scale into W_q
    wk = w_qkv[:, Hd:Hd + HEAD_DIM]                                   # (H, hd)
    wv = w_qkv[:, Hd + HEAD_DIM:]                                     # (H, hd)
    wd = params["w_dense"].reshape(NUM_HEADS, HEAD_DIM, Hd)           # (nh, hd, H)

    # rotate_half as a constant +/-1 permutation matrix (applied on the MXU)
    half = HEAD_DIM // 2
    rot = jnp.zeros((HEAD_DIM, HEAD_DIM), jnp.float32)
    rot = rot.at[jnp.arange(half) + half, jnp.arange(half)].set(-1.0)   # out[:half] = -x2
    rot = rot.at[jnp.arange(half), jnp.arange(half) + half].set(1.0)    # out[half:] =  x1

    # rotary tables tiled to the stacked-row layouts (row = h*R + b*S + s for Q)
    cos_k = jnp.tile(cos, (Bsz, 1))                   # (R, hd)
    sin_k = jnp.tile(sin, (Bsz, 1))
    cos_q = jnp.tile(cos, (NUM_HEADS * Bsz, 1))       # (nh*R, hd)
    sin_q = jnp.tile(sin, (NUM_HEADS * Bsz, 1))

    # additive bias that disables attention across different batch elements
    row_b = (jnp.arange(RQ) % R) // Sl
    col_b = jnp.arange(R) // Sl
    bias = jnp.where(row_b[:, None] == col_b[None, :], 0.0, NEG_INF).astype(jnp.float32)

    def _full(shape):
        return pl.BlockSpec(shape, lambda i, _n=len(shape): (0,) * _n)

    out2d = pl.pallas_call(
        falcon_layer_kernel,
        out_shape=jax.ShapeDtypeStruct((R, Hd), jnp.float32),
        grid_spec=pltpu.PrefetchScalarGridSpec(
            num_scalar_prefetch=0,
            grid=(1,),
            in_specs=[
                _full((R, Hd)),                       # hidden_states (rows = b*S+s)
                _full((1, Hd)), _full((1, Hd)),       # LN weight / bias
                _full((NUM_HEADS, Hd, HEAD_DIM)),     # per-head W_q^T (pre-scaled)
                _full((Hd, HEAD_DIM)),                # W_k^T (shared KV head)
                _full((Hd, HEAD_DIM)),                # W_v^T
                _full((NUM_HEADS, HEAD_DIM, Hd)),     # per-head row blocks of W_dense^T
                _full((Hd, FFN)),                     # W_h_to_4h^T
                _full((FFN, Hd)),                     # W_4h_to_h^T
                _full((HEAD_DIM, HEAD_DIM)),          # rotate_half matrix
                _full((RQ, HEAD_DIM)), _full((RQ, HEAD_DIM)),   # cos/sin for stacked Q
                _full((R, HEAD_DIM)), _full((R, HEAD_DIM)),     # cos/sin for K
                _full((RQ, R)),                       # cross-batch attention bias
            ],
            out_specs=pl.BlockSpec((R, Hd), lambda i: (0, 0)),
        ),
        compiler_params=pltpu.CompilerParams(dimension_semantics=("parallel",)),
    )(x2d, params["ln_w"], params["ln_b"], wq, wk, wv, wd,
      params["w_h4h"], params["w_4hh"], rot, cos_q, sin_q, cos_k, sin_k, bias)

    return out2d.reshape(Bsz, Sl, Hd)


# ---------------------------------------------------------------------------
# Pure-JAX reference (mirrors the PyTorch forward exactly) for verification.
# ---------------------------------------------------------------------------
def reference(x, params, cos, sin):
    ln_w = params["ln_w"][0]
    ln_b = params["ln_b"][0]
    mean = jnp.mean(x, axis=-1, keepdims=True)
    var = jnp.mean((x - mean) ** 2, axis=-1, keepdims=True)
    ln = (x - mean) / jnp.sqrt(var + EPS) * ln_w + ln_b

    qkv = ln @ params["w_qkv"]                              # (B, S, QKV)
    qkv = qkv.reshape(B, S, NUM_HEADS + 2, HEAD_DIM)
    q = jnp.transpose(qkv[:, :, :NUM_HEADS], (0, 2, 1, 3))                 # (B, nh, S, hd)
    k = jnp.transpose(qkv[:, :, NUM_HEADS:NUM_HEADS + 1], (0, 2, 1, 3))    # (B, 1, S, hd)
    v = jnp.transpose(qkv[:, :, NUM_HEADS + 1:], (0, 2, 1, 3))             # (B, 1, S, hd)

    q = q * cos + _rotate_half(q) * sin
    k = k * cos + _rotate_half(k) * sin

    scores = jnp.matmul(q, jnp.swapaxes(k, -1, -2)) / jnp.sqrt(float(HEAD_DIM))
    p = jax.nn.softmax(scores, axis=-1)
    ctx = jnp.matmul(p, v)                                  # (B, nh, S, hd)
    ctx = jnp.transpose(ctx, (0, 2, 1, 3)).reshape(B, S, H)
    attn_out = ctx @ params["w_dense"]

    mlp = _gelu_exact(ln @ params["w_h4h"]) @ params["w_4hh"]
    return x + attn_out + mlp


if __name__ == "__main__":
    key = jax.random.PRNGKey(0)
    k0, k1, k2, k3, k4, k5, k6 = jax.random.split(key, 7)

    params = {
        "ln_w": 1.0 + 0.1 * jax.random.normal(k1, (1, H), jnp.float32),
        "ln_b": 0.1 * jax.random.normal(k2, (1, H), jnp.float32),
        "w_qkv": 0.05 * jax.random.normal(k3, (H, QKV_DIM), jnp.float32),
        "w_dense": 0.05 * jax.random.normal(k4, (H, H), jnp.float32),
        "w_h4h": 0.05 * jax.random.normal(k5, (H, FFN), jnp.float32),
        "w_4hh": 0.05 * jax.random.normal(k6, (FFN, H), jnp.float32),
    }

    # rotary tables for position_ids = arange(S), past_kv_length = 0
    inv_freq = 1.0 / (ROPE_THETA ** (jnp.arange(0, HEAD_DIM, 2, dtype=jnp.float32) / HEAD_DIM))
    t = jnp.arange(S, dtype=jnp.float32)
    freqs = jnp.outer(t, inv_freq)
    emb = jnp.concatenate((freqs, freqs), axis=-1)          # (S, HEAD_DIM)
    cos, sin = jnp.cos(emb), jnp.sin(emb)

    x = jax.random.normal(k0, (B, S, H), jnp.float32)

    # TODO(synk): KV-cache (layer_past) update and attention_mask handling are not
    # modeled; attention is full/bidirectional, matching this module's SDPA call
    # (attention_mask=None, is_causal=False), not a causal decode path.
    out = jax.block_until_ready(falcon_decoder_layer(x, params, cos, sin))
    ref = reference(x, params, cos, sin)

    assert out.shape == (B, S, H)
    assert jnp.allclose(out, ref, atol=1e-3, rtol=1e-3), (
        f"mismatch: max abs err {jnp.max(jnp.abs(out - ref))}")
    print("KERNEL_OK")
</pallas_src>

<mosaic_0001>
module attributes {stable_mosaic.version = 11 : i64} {
  func.func @falcon_layer_kernel(%arg0: i32, %arg1: memref<32x64xf32, #tpu.memory_space<vmem>>, %arg2: memref<1x64xf32, #tpu.memory_space<vmem>>, %arg3: memref<1x64xf32, #tpu.memory_space<vmem>>, %arg4: memref<4x64x16xf32, #tpu.memory_space<vmem>>, %arg5: memref<64x16xf32, #tpu.memory_space<vmem>>, %arg6: memref<64x16xf32, #tpu.memory_space<vmem>>, %arg7: memref<4x16x64xf32, #tpu.memory_space<vmem>>, %arg8: memref<64x256xf32, #tpu.memory_space<vmem>>, %arg9: memref<256x64xf32, #tpu.memory_space<vmem>>, %arg10: memref<16x16xf32, #tpu.memory_space<vmem>>, %arg11: memref<128x16xf32, #tpu.memory_space<vmem>>, %arg12: memref<128x16xf32, #tpu.memory_space<vmem>>, %arg13: memref<32x16xf32, #tpu.memory_space<vmem>>, %arg14: memref<32x16xf32, #tpu.memory_space<vmem>>, %arg15: memref<128x32xf32, #tpu.memory_space<vmem>>, %arg16: memref<32x64xf32, #tpu.memory_space<vmem>>) attributes {dimension_semantics = [#tpu.dimension_semantics<parallel>], iteration_bounds = array<i64: 1>, scalar_prefetch = 0 : i64, scratch_operands = 0 : i64, tpu.core_type = #tpu.core_type<tc>, window_params = [{pipeline_mode = #tpu.pipeline_mode<synchronous>, transform_indices = @transform_0, window_bounds = array<i64: 32, 64>}, {pipeline_mode = #tpu.pipeline_mode<synchronous>, transform_indices = @transform_1, window_bounds = array<i64: 1, 64>}, {pipeline_mode = #tpu.pipeline_mode<synchronous>, transform_indices = @transform_2, window_bounds = array<i64: 1, 64>}, {pipeline_mode = #tpu.pipeline_mode<synchronous>, transform_indices = @transform_3, window_bounds = array<i64: 4, 64, 16>}, {pipeline_mode = #tpu.pipeline_mode<synchronous>, transform_indices = @transform_4, window_bounds = array<i64: 64, 16>}, {pipeline_mode = #tpu.pipeline_mode<synchronous>, transform_indices = @transform_5, window_bounds = array<i64: 64, 16>}, {pipeline_mode = #tpu.pipeline_mode<synchronous>, transform_indices = @transform_6, window_bounds = array<i64: 4, 16, 64>}, {pipeline_mode = #tpu.pipeline_mode<synchronous>, transform_indices = @transform_7, window_bounds = array<i64: 64, 256>}, {pipeline_mode = #tpu.pipeline_mode<synchronous>, transform_indices = @transform_8, window_bounds = array<i64: 256, 64>}, {pipeline_mode = #tpu.pipeline_mode<synchronous>, transform_indices = @transform_9, window_bounds = array<i64: 16, 16>}, {pipeline_mode = #tpu.pipeline_mode<synchronous>, transform_indices = @transform_10, window_bounds = array<i64: 128, 16>}, {pipeline_mode = #tpu.pipeline_mode<synchronous>, transform_indices = @transform_11, window_bounds = array<i64: 128, 16>}, {pipeline_mode = #tpu.pipeline_mode<synchronous>, transform_indices = @transform_12, window_bounds = array<i64: 32, 16>}, {pipeline_mode = #tpu.pipeline_mode<synchronous>, transform_indices = @transform_13, window_bounds = array<i64: 32, 16>}, {pipeline_mode = #tpu.pipeline_mode<synchronous>, transform_indices = @transform_14, window_bounds = array<i64: 128, 32>}, {pipeline_mode = #tpu.pipeline_mode<synchronous>, transform_indices = @transform_15, window_bounds = array<i64: 32, 64>}]} {
    %c0 = arith.constant 0 : index
    %c0_0 = arith.constant 0 : index
    %0 = vector.load %arg1[%c0, %c0_0] : memref<32x64xf32, #tpu.memory_space<vmem>>, vector<32x64xf32>
    %cst = arith.constant dense<0.000000e+00> : vector<32xf32>
    %1 = vector.multi_reduction <add>, %0, %cst [1] : vector<32x64xf32> to vector<32xf32>
    %2 = vector.shape_cast %1 : vector<32xf32> to vector<32x1xf32>
    %cst_1 = arith.constant 6.400000e+01 : f32
    %3 = vector.broadcast %cst_1 : f32 to vector<32x1xf32>
    %4 = arith.divf %2, %3 : vector<32x1xf32>
    %5 = vector.broadcast %4 : vector<32x1xf32> to vector<32x64xf32>
    %6 = arith.subf %0, %5 : vector<32x64xf32>
    %7 = arith.mulf %6, %6 : vector<32x64xf32>
    %cst_2 = arith.constant dense<0.000000e+00> : vector<32xf32>
    %8 = vector.multi_reduction <add>, %7, %cst_2 [1] : vector<32x64xf32> to vector<32xf32>
    %9 = vector.shape_cast %8 : vector<32xf32> to vector<32x1xf32>
    %cst_3 = arith.constant 6.400000e+01 : f32
    %10 = vector.broadcast %cst_3 : f32 to vector<32x1xf32>
    %11 = arith.divf %9, %10 : vector<32x1xf32>
    %12 = vector.broadcast %4 : vector<32x1xf32> to vector<32x64xf32>
    %13 = arith.subf %0, %12 : vector<32x64xf32>
    %cst_4 = arith.constant 9.99999974E-6 : f32
    %14 = vector.broadcast %cst_4 : f32 to vector<32x1xf32>
    %15 = arith.addf %11, %14 : vector<32x1xf32>
    %16 = math.rsqrt %15 : vector<32x1xf32>
    %17 = vector.broadcast %16 : vector<32x1xf32> to vector<32x64xf32>
    %18 = arith.mulf %13, %17 : vector<32x64xf32>
    %c0_5 = arith.constant 0 : index
    %c0_6 = arith.constant 0 : index
    %19 = vector.load %arg2[%c0_5, %c0_6] : memref<1x64xf32, #tpu.memory_space<vmem>>, vector<1x64xf32>
    %20 = vector.broadcast %19 : vector<1x64xf32> to vector<32x64xf32>
    %21 = arith.mulf %18, %20 : vector<32x64xf32>
    %c0_7 = arith.constant 0 : index
    %c0_8 = arith.constant 0 : index
    %22 = vector.load %arg3[%c0_7, %c0_8] : memref<1x64xf32, #tpu.memory_space<vmem>>, vector<1x64xf32>
    %23 = vector.broadcast %22 : vector<1x64xf32> to vector<32x64xf32>
    %24 = arith.addf %21, %23 : vector<32x64xf32>
    %c0_9 = arith.constant 0 : index
    %c0_10 = arith.constant 0 : index
    %25 = vector.load %arg10[%c0_9, %c0_10] : memref<16x16xf32, #tpu.memory_space<vmem>>, vector<16x16xf32>
    %c0_11 = arith.constant 0 : index
    %c0_12 = arith.constant 0 : index
    %26 = vector.load %arg5[%c0_11, %c0_12] : memref<64x16xf32, #tpu.memory_space<vmem>>, vector<64x16xf32>
    %cst_13 = arith.constant dense<0.000000e+00> : vector<32x16xf32>
    %27 = tpu.matmul %24, %26, %cst_13 {dimension_numbers = #tpu.dot_dimension_numbers<[1], [0], [0], [1], [0, 0, 1, 1], [], []>} : vector<32x64xf32>, vector<64x16xf32>, vector<32x16xf32> -> vector<32x16xf32>
    %c0_14 = arith.constant 0 : index
    %c0_15 = arith.constant 0 : index
    %28 = vector.load %arg6[%c0_14, %c0_15] : memref<64x16xf32, #tpu.memory_space<vmem>>, vector<64x16xf32>
    %cst_16 = arith.constant dense<0.000000e+00> : vector<32x16xf32>
    %29 = tpu.matmul %24, %28, %cst_16 {dimension_numbers = #tpu.dot_dimension_numbers<[1], [0], [0], [1], [0, 0, 1, 1], [], []>} : vector<32x64xf32>, vector<64x16xf32>, vector<32x16xf32> -> vector<32x16xf32>
    %c0_17 = arith.constant 0 : index
    %c0_18 = arith.constant 0 : index
    %30 = vector.load %arg13[%c0_17, %c0_18] : memref<32x16xf32, #tpu.memory_space<vmem>>, vector<32x16xf32>
    %31 = arith.mulf %27, %30 : vector<32x16xf32>
    %cst_19 = arith.constant dense<0.000000e+00> : vector<32x16xf32>
    %32 = tpu.matmul %27, %25, %cst_19 {dimension_numbers = #tpu.dot_dimension_numbers<[1], [0], [0], [1], [0, 0, 1, 1], [], []>} : vector<32x16xf32>, vector<16x16xf32>, vector<32x16xf32> -> vector<32x16xf32>
    %c0_20 = arith.constant 0 : index
    %c0_21 = arith.constant 0 : index
    %33 = vector.load %arg14[%c0_20, %c0_21] : memref<32x16xf32, #tpu.memory_space<vmem>>, vector<32x16xf32>
    %34 = arith.mulf %32, %33 : vector<32x16xf32>
    %35 = arith.addf %31, %34 : vector<32x16xf32>
    %c0_22 = arith.constant 0 : index
    %c0_23 = arith.constant 0 : index
    %c0_24 = arith.constant 0 : index
    %36 = vector.load %arg4[%c0_22, %c0_23, %c0_24] : memref<4x64x16xf32, #tpu.memory_space<vmem>>, vector<1x64x16xf32>
    %37 = vector.shape_cast %36 : vector<1x64x16xf32> to vector<64x16xf32>
    %cst_25 = arith.constant dense<0.000000e+00> : vector<32x16xf32>
    %38 = tpu.matmul %24, %37, %cst_25 {dimension_numbers = #tpu.dot_dimension_numbers<[1], [0], [0], [1], [0, 0, 1, 1], [], []>} : vector<32x64xf32>, vector<64x16xf32>, vector<32x16xf32> -> vector<32x16xf32>
    %c1 = arith.constant 1 : index
    %c0_26 = arith.constant 0 : index
    %c0_27 = arith.constant 0 : index
    %39 = vector.load %arg4[%c1, %c0_26, %c0_27] : memref<4x64x16xf32, #tpu.memory_space<vmem>>, vector<1x64x16xf32>
    %40 = vector.shape_cast %39 : vector<1x64x16xf32> to vector<64x16xf32>
    %cst_28 = arith.constant dense<0.000000e+00> : vector<32x16xf32>
    %41 = tpu.matmul %24, %40, %cst_28 {dimension_numbers = #tpu.dot_dimension_numbers<[1], [0], [0], [1], [0, 0, 1, 1], [], []>} : vector<32x64xf32>, vector<64x16xf32>, vector<32x16xf32> -> vector<32x16xf32>
    %c2 = arith.constant 2 : index
    %c0_29 = arith.constant 0 : index
    %c0_30 = arith.constant 0 : index
    %42 = vector.load %arg4[%c2, %c0_29, %c0_30] : memref<4x64x16xf32, #tpu.memory_space<vmem>>, vector<1x64x16xf32>
    %43 = vector.shape_cast %42 : vector<1x64x16xf32> to vector<64x16xf32>
    %cst_31 = arith.constant dense<0.000000e+00> : vector<32x16xf32>
    %44 = tpu.matmul %24, %43, %cst_31 {dimension_numbers = #tpu.dot_dimension_numbers<[1], [0], [0], [1], [0, 0, 1, 1], [], []>} : vector<32x64xf32>, vector<64x16xf32>, vector<32x16xf32> -> vector<32x16xf32>
    %c3 = arith.constant 3 : index
    %c0_32 = arith.constant 0 : index
    %c0_33 = arith.constant 0 : index
    %45 = vector.load %arg4[%c3, %c0_32, %c0_33] : memref<4x64x16xf32, #tpu.memory_space<vmem>>, vector<1x64x16xf32>
    %46 = vector.shape_cast %45 : vector<1x64x16xf32> to vector<64x16xf32>
    %cst_34 = arith.constant dense<0.000000e+00> : vector<32x16xf32>
    %47 = tpu.matmul %24, %46, %cst_34 {dimension_numbers = #tpu.dot_dimension_numbers<[1], [0], [0], [1], [0, 0, 1, 1], [], []>} : vector<32x64xf32>, vector<64x16xf32>, vector<32x16xf32> -> vector<32x16xf32>
    %48 = tpu.concatenate %38, %41, %44, %47 in 0 : vector<32x16xf32>, vector<32x16xf32>, vector<32x16xf32>, vector<32x16xf32> -> vector<128x16xf32>
    %c0_35 = arith.constant 0 : index
    %c0_36 = arith.constant 0 : index
    %49 = vector.load %arg11[%c0_35, %c0_36] : memref<128x16xf32, #tpu.memory_space<vmem>>, vector<128x16xf32>
    %50 = arith.mulf %48, %49 : vector<128x16xf32>
    %cst_37 = arith.constant dense<0.000000e+00> : vector<128x16xf32>
    %51 = tpu.matmul %48, %25, %cst_37 {dimension_numbers = #tpu.dot_dimension_numbers<[1], [0], [0], [1], [0, 0, 1, 1], [], []>} : vector<128x16xf32>, vector<16x16xf32>, vector<128x16xf32> -> vector<128x16xf32>
    %c0_38 = arith.constant 0 : index
    %c0_39 = arith.constant 0 : index
    %52 = vector.load %arg12[%c0_38, %c0_39] : memref<128x16xf32, #tpu.memory_space<vmem>>, vector<128x16xf32>
    %53 = arith.mulf %51, %52 : vector<128x16xf32>
    %54 = arith.addf %50, %53 : vector<128x16xf32>
    %55 = tpu.transpose %35, [1, 0] : vector<32x16xf32> -> vector<16x32xf32>
    %cst_40 = arith.constant dense<0.000000e+00> : vector<128x32xf32>
    %56 = tpu.matmul %54, %55, %cst_40 {dimension_numbers = #tpu.dot_dimension_numbers<[1], [0], [0], [1], [0, 0, 1, 1], [], []>} : vector<128x16xf32>, vector<16x32xf32>, vector<128x32xf32> -> vector<128x32xf32>
    %c0_41 = arith.constant 0 : index
    %c0_42 = arith.constant 0 : index
    %57 = vector.load %arg15[%c0_41, %c0_42] : memref<128x32xf32, #tpu.memory_space<vmem>>, vector<128x32xf32>
    %58 = arith.addf %56, %57 : vector<128x32xf32>
    %cst_43 = arith.constant dense<0xFF800000> : vector<128xf32>
    %59 = vector.multi_reduction <maximumf>, %58, %cst_43 [1] : vector<128x32xf32> to vector<128xf32>
    %60 = vector.shape_cast %59 : vector<128xf32> to vector<128x1xf32>
    %61 = vector.broadcast %60 : vector<128x1xf32> to vector<128x32xf32>
    %62 = arith.subf %58, %61 : vector<128x32xf32>
    %63 = math.exp %62 : vector<128x32xf32>
    %cst_44 = arith.constant dense<0.000000e+00> : vector<128xf32>
    %64 = vector.multi_reduction <add>, %63, %cst_44 [1] : vector<128x32xf32> to vector<128xf32>
    %65 = vector.shape_cast %64 : vector<128xf32> to vector<128x1xf32>
    %66 = tpu.reciprocal %65 {approx = true} : vector<128x1xf32> -> vector<128x1xf32>
    %67 = vector.broadcast %66 : vector<128x1xf32> to vector<128x32xf32>
    %68 = arith.mulf %63, %67 : vector<128x32xf32>
    %cst_45 = arith.constant dense<0.000000e+00> : vector<128x16xf32>
    %69 = tpu.matmul %68, %29, %cst_45 {dimension_numbers = #tpu.dot_dimension_numbers<[1], [0], [0], [1], [0, 0, 1, 1], [], []>} : vector<128x32xf32>, vector<32x16xf32>, vector<128x16xf32> -> vector<128x16xf32>
    %70 = vector.extract_strided_slice %69 {offsets = [0, 0], sizes = [32, 16], strides = [1, 1]} : vector<128x16xf32> to vector<32x16xf32>
    %c0_46 = arith.constant 0 : index
    %c0_47 = arith.constant 0 : index
    %c0_48 = arith.constant 0 : index
    %71 = vector.load %arg7[%c0_46, %c0_47, %c0_48] : memref<4x16x64xf32, #tpu.memory_space<vmem>>, vector<1x16x64xf32>
    %72 = vector.shape_cast %71 : vector<1x16x64xf32> to vector<16x64xf32>
    %cst_49 = arith.constant dense<0.000000e+00> : vector<32x64xf32>
    %73 = tpu.matmul %70, %72, %cst_49 {dimension_numbers = #tpu.dot_dimension_numbers<[1], [0], [0], [1], [0, 0, 1, 1], [], []>} : vector<32x16xf32>, vector<16x64xf32>, vector<32x64xf32> -> vector<32x64xf32>
    %74 = vector.extract_strided_slice %69 {offsets = [32, 0], sizes = [32, 16], strides = [1, 1]} : vector<128x16xf32> to vector<32x16xf32>
    %c1_50 = arith.constant 1 : index
    %c0_51 = arith.constant 0 : index
    %c0_52 = arith.constant 0 : index
    %75 = vector.load %arg7[%c1_50, %c0_51, %c0_52] : memref<4x16x64xf32, #tpu.memory_space<vmem>>, vector<1x16x64xf32>
    %76 = vector.shape_cast %75 : vector<1x16x64xf32> to vector<16x64xf32>
    %cst_53 = arith.constant dense<0.000000e+00> : vector<32x64xf32>
    %77 = tpu.matmul %74, %76, %cst_53 {dimension_numbers = #tpu.dot_dimension_numbers<[1], [0], [0], [1], [0, 0, 1, 1], [], []>} : vector<32x16xf32>, vector<16x64xf32>, vector<32x64xf32> -> vector<32x64xf32>
    %78 = arith.addf %73, %77 : vector<32x64xf32>
    %79 = vector.extract_strided_slice %69 {offsets = [64, 0], sizes = [32, 16], strides = [1, 1]} : vector<128x16xf32> to vector<32x16xf32>
    %c2_54 = arith.constant 2 : index
    %c0_55 = arith.constant 0 : index
    %c0_56 = arith.constant 0 : index
    %80 = vector.load %arg7[%c2_54, %c0_55, %c0_56] : memref<4x16x64xf32, #tpu.memory_space<vmem>>, vector<1x16x64xf32>
    %81 = vector.shape_cast %80 : vector<1x16x64xf32> to vector<16x64xf32>
    %cst_57 = arith.constant dense<0.000000e+00> : vector<32x64xf32>
    %82 = tpu.matmul %79, %81, %cst_57 {dimension_numbers = #tpu.dot_dimension_numbers<[1], [0], [0], [1], [0, 0, 1, 1], [], []>} : vector<32x16xf32>, vector<16x64xf32>, vector<32x64xf32> -> vector<32x64xf32>
    %83 = arith.addf %78, %82 : vector<32x64xf32>
    %84 = vector.extract_strided_slice %69 {offsets = [96, 0], sizes = [32, 16], strides = [1, 1]} : vector<128x16xf32> to vector<32x16xf32>
    %c3_58 = arith.constant 3 : index
    %c0_59 = arith.constant 0 : index
    %c0_60 = arith.constant 0 : index
    %85 = vector.load %arg7[%c3_58, %c0_59, %c0_60] : memref<4x16x64xf32, #tpu.memory_space<vmem>>, vector<1x16x64xf32>
    %86 = vector.shape_cast %85 : vector<1x16x64xf32> to vector<16x64xf32>
    %cst_61 = arith.constant dense<0.000000e+00> : vector<32x64xf32>
    %87 = tpu.matmul %84, %86, %cst_61 {dimension_numbers = #tpu.dot_dimension_numbers<[1], [0], [0], [1], [0, 0, 1, 1], [], []>} : vector<32x16xf32>, vector<16x64xf32>, vector<32x64xf32> -> vector<32x64xf32>
    %88 = arith.addf %83, %87 : vector<32x64xf32>
    %c0_62 = arith.constant 0 : index
    %c0_63 = arith.constant 0 : index
    %89 = vector.load %arg8[%c0_62, %c0_63] : memref<64x256xf32, #tpu.memory_space<vmem>>, vector<64x256xf32>
    %cst_64 = arith.constant dense<0.000000e+00> : vector<32x256xf32>
    %90 = tpu.matmul %24, %89, %cst_64 {dimension_numbers = #tpu.dot_dimension_numbers<[1], [0], [0], [1], [0, 0, 1, 1], [], []>} : vector<32x64xf32>, vector<64x256xf32>, vector<32x256xf32> -> vector<32x256xf32>
    %cst_65 = arith.constant 5.000000e-01 : f32
    %91 = vector.broadcast %cst_65 : f32 to vector<32x256xf32>
    %92 = arith.mulf %91, %90 : vector<32x256xf32>
    %cst_66 = arith.constant 2.000000e+00 : f32
    %93 = math.sqrt %cst_66 : f32
    %cst_67 = arith.constant 1.000000e+00 : f32
    %94 = arith.divf %cst_67, %93 : f32
    %95 = vector.broadcast %94 : f32 to vector<32x256xf32>
    %96 = arith.mulf %90, %95 : vector<32x256xf32>
    %97 = math.erf %96 : vector<32x256xf32>
    %cst_68 = arith.constant 1.000000e+00 : f32
    %98 = vector.broadcast %cst_68 : f32 to vector<32x256xf32>
    %99 = arith.addf %98, %97 : vector<32x256xf32>
    %100 = arith.mulf %92, %99 : vector<32x256xf32>
    %c0_69 = arith.constant 0 : index
    %c0_70 = arith.constant 0 : index
    %101 = vector.load %arg9[%c0_69, %c0_70] : memref<256x64xf32, #tpu.memory_space<vmem>>, vector<256x64xf32>
    %cst_71 = arith.constant dense<0.000000e+00> : vector<32x64xf32>
    %102 = tpu.matmul %100, %101, %cst_71 {dimension_numbers = #tpu.dot_dimension_numbers<[1], [0], [0], [1], [0, 0, 1, 1], [], []>} : vector<32x256xf32>, vector<256x64xf32>, vector<32x64xf32> -> vector<32x64xf32>
    %103 = arith.addf %0, %88 : vector<32x64xf32>
    %104 = arith.addf %103, %102 : vector<32x64xf32>
    %c0_72 = arith.constant 0 : index
    %c0_73 = arith.constant 0 : index
    %105 = vector.load %arg16[%c0_72, %c0_73] : memref<32x64xf32, #tpu.memory_space<vmem>>, vector<32x64xf32>
    tpu.vector_store %arg16[%c0_72, %c0_73], %104 {strides = array<i32>} : memref<32x64xf32, #tpu.memory_space<vmem>>, vector<32x64xf32>,
    return
  }
  func.func @transform_0(%arg0: i32) -> (i32, i32) {
    %c0_i32 = arith.constant 0 : i32
    %c0_i32_0 = arith.constant 0 : i32
    %c0_i32_1 = arith.constant 0 : i32
    return %c0_i32, %c0_i32_0 : i32, i32
  }
  func.func @transform_1(%arg0: i32) -> (i32, i32) {
    %c0_i32 = arith.constant 0 : i32
    %c0_i32_0 = arith.constant 0 : i32
    %c0_i32_1 = arith.constant 0 : i32
    return %c0_i32, %c0_i32_0 : i32, i32
  }
  func.func @transform_2(%arg0: i32) -> (i32, i32) {
    %c0_i32 = arith.constant 0 : i32
    %c0_i32_0 = arith.constant 0 : i32
    %c0_i32_1 = arith.constant 0 : i32
    return %c0_i32, %c0_i32_0 : i32, i32
  }
  func.func @transform_3(%arg0: i32) -> (i32, i32, i32) {
    %c0_i32 = arith.constant 0 : i32
    %c0_i32_0 = arith.constant 0 : i32
    %c0_i32_1 = arith.constant 0 : i32
    %c0_i32_2 = arith.constant 0 : i32
    return %c0_i32, %c0_i32_0, %c0_i32_1 : i32, i32, i32
  }
  func.func @transform_4(%arg0: i32) -> (i32, i32) {
    %c0_i32 = arith.constant 0 : i32
    %c0_i32_0 = arith.constant 0 : i32
    %c0_i32_1 = arith.constant 0 : i32
    return %c0_i32, %c0_i32_0 : i32, i32
  }
  func.func @transform_5(%arg0: i32) -> (i32, i32) {
    %c0_i32 = arith.constant 0 : i32
    %c0_i32_0 = arith.constant 0 : i32
    %c0_i32_1 = arith.constant 0 : i32
    return %c0_i32, %c0_i32_0 : i32, i32
  }
  func.func @transform_6(%arg0: i32) -> (i32, i32, i32) {
    %c0_i32 = arith.constant 0 : i32
    %c0_i32_0 = arith.constant 0 : i32
    %c0_i32_1 = arith.constant 0 : i32
    %c0_i32_2 = arith.constant 0 : i32
    return %c0_i32, %c0_i32_0, %c0_i32_1 : i32, i32, i32
  }
  func.func @transform_7(%arg0: i32) -> (i32, i32) {
    %c0_i32 = arith.constant 0 : i32
    %c0_i32_0 = arith.constant 0 : i32
    %c0_i32_1 = arith.constant 0 : i32
    return %c0_i32, %c0_i32_0 : i32, i32
  }
  func.func @transform_8(%arg0: i32) -> (i32, i32) {
    %c0_i32 = arith.constant 0 : i32
    %c0_i32_0 = arith.constant 0 : i32
    %c0_i32_1 = arith.constant 0 : i32
    return %c0_i32, %c0_i32_0 : i32, i32
  }
  func.func @transform_9(%arg0: i32) -> (i32, i32) {
    %c0_i32 = arith.constant 0 : i32
    %c0_i32_0 = arith.constant 0 : i32
    %c0_i32_1 = arith.constant 0 : i32
    return %c0_i32, %c0_i32_0 : i32, i32
  }
  func.func @transform_10(%arg0: i32) -> (i32, i32) {
    %c0_i32 = arith.constant 0 : i32
    %c0_i32_0 = arith.constant 0 : i32
    %c0_i32_1 = arith.constant 0 : i32
    return %c0_i32, %c0_i32_0 : i32, i32
  }
  func.func @transform_11(%arg0: i32) -> (i32, i32) {
    %c0_i32 = arith.constant 0 : i32
    %c0_i32_0 = arith.constant 0 : i32
    %c0_i32_1 = arith.constant 0 : i32
    return %c0_i32, %c0_i32_0 : i32, i32
  }
  func.func @transform_12(%arg0: i32) -> (i32, i32) {
    %c0_i32 = arith.constant 0 : i32
    %c0_i32_0 = arith.constant 0 : i32
    %c0_i32_1 = arith.constant 0 : i32
    return %c0_i32, %c0_i32_0 : i32, i32
  }
  func.func @transform_13(%arg0: i32) -> (i32, i32) {
    %c0_i32 = arith.constant 0 : i32
    %c0_i32_0 = arith.constant 0 : i32
    %c0_i32_1 = arith.constant 0 : i32
    return %c0_i32, %c0_i32_0 : i32, i32
  }
  func.func @transform_14(%arg0: i32) -> (i32, i32) {
    %c0_i32 = arith.constant 0 : i32
    %c0_i32_0 = arith.constant 0 : i32
    %c0_i32_1 = arith.constant 0 : i32
    return %c0_i32, %c0_i32_0 : i32, i32
  }
  func.func @transform_15(%arg0: i32) -> (i32, i32) {
    %c0_i32 = arith.constant 0 : i32
    %c0_i32_0 = arith.constant 0 : i32
    %c0_i32_1 = arith.constant 0 : i32
    return %c0_i32, %c0_i32_0 : i32, i32
  }
}

</mosaic_0001>

<bundles_post_ra>
// kernel: tpu_custom_call.1
= control target key start
LH: loop header
LB: loop body
LE: loop exit
PB: predicated region body
PF: predicated region fallthrough
CT: control target
= control target key end

     0   :  { %vm55_vm0 = vcmask 523264   ;;  %s4353_s0 = inlined_call_operand.vmem [shape: f32[32,64], index: 0, kind: input, shape index: {}]   ;;  %s4354_s1 = inlined_call_operand.vmem [shape: f32[1,64], index: 1, kind: input, shape index: {}]   ;;  %s4355_s2 = inlined_call_operand.vmem [shape: f32[1,64], index: 2, kind: input, shape index: {}]   ;;  %s4356_s3 = inlined_call_operand.vmem [shape: f32[4,64,16], index: 3, kind: input, shape index: {}]   ;;  %s4357_s4 = inlined_call_operand.vmem [shape: f32[64,16], index: 4, kind: input, shape index: {}]   ;;  %s4358_s5 = inlined_call_operand.vmem [shape: f32[64,16], index: 5, kind: input, shape index: {}]   ;;  %s4359_s6 = inlined_call_operand.vmem [shape: f32[4,16,64], index: 6, kind: input, shape index: {}]   ;;  %s4360_s7 = inlined_call_operand.vmem [shape: f32[64,256], index: 7, kind: input, shape index: {}]   ;;  %s4361_s8 = inlined_call_operand.vmem [shape: f32[256,64], index: 8, kind: input, shape index: {}]   ;;  %s4362_s9 = inlined_call_operand.vmem [shape: f32[16,16], index: 9, kind: input, shape index: {}]   ;;  %s4363_s10 = inlined_call_operand.vmem [shape: f32[128,16], index: 10, kind: input, shape index: {}]   ;;  %s4364_s11 = inlined_call_operand.vmem [shape: f32[128,16], index: 11, kind: input, shape index: {}]   ;;  %s4365_s12 = inlined_call_operand.vmem [shape: f32[32,16], index: 12, kind: input, shape index: {}]   ;;  %s4366_s13 = inlined_call_operand.vmem [shape: f32[32,16], index: 13, kind: input, shape index: {}]   ;;  %s4367_s14 = inlined_call_operand.vmem [shape: f32[128,32], index: 14, kind: input, shape index: {}]   ;;  %s4368_s15 = inlined_call_operand.hbm [shape: f32[32,64], index: 15, kind: output, shape index: {}]  }
   0x1   :  { %v51_v0 = vld [vmem:[%s4353_s0] sm:$0xff]  ;;  %v53_v1 = vld [vmem:[%s4353_s0 + $0x10] sm:$0xff]  ;;  %v52_v2 = vld [vmem:[%s4353_s0 + $0x8] sm:$0xff] }
   0x2   :  { %v56_v3 = vsel %vm55_vm0, %v51_v0, 0.0  ;;  %v62_v4 = vsel %vm55_vm0, %v53_v1, 0.0  ;;  %v54_v5 = vld [vmem:[%s4353_s0 + $0x18] sm:$0xff] }
   0x3   :  { %20 = vsyncpa [#allocation3], 0  ;;  %57 = vadd.xlane.f32.xlu0 %v56_v3  ;;  %63 = vadd.xlane.f32.xlu1 %v62_v4  ;;  %v59_v6 = vsel %vm55_vm0, %v52_v2, 0.0  ;;  %v65_v7 = vsel %vm55_vm0, %v54_v5, 0.0  ;;  %v238_v28 = vld [vmem:[%s4358_s5] sm:$0xff]  ;;  %v239_v29 = vld [vmem:[%s4358_s5 + $0x8] sm:$0xff] }
   0x4   :  { %v3011_v30 = vpack.c.bf16 %v239_v29, %v238_v28  ;;  %v133_v31 = vld [vmem:[%s4357_s4] sm:$0xff]  ;;  %v134_v32 = vld [vmem:[%s4357_s4 + $0x8] sm:$0xff]  ;;  %v240_v34 = vld [vmem:[%s4358_s5 + $0x10] sm:$0xff]  ;;  %vm339_vm1 = vcmask 130048   ;;  %vm1318_vm3 = vcmask 261120   ;;  %s3318_s22 = smov [#allocation2]  }
   0x5   :  { %v2995_v33 = vpack.c.bf16 %v134_v32, %v133_v31  ;;  %v241_v35 = vld [vmem:[%s4358_s5 + $0x18] sm:$0xff]  ;;  %v135_v37 = vld [vmem:[%s4357_s4 + $0x10] sm:$0xff]  ;;  %v242_v40 = vld [vmem:[%s4358_s5 + $0x20] sm:$0xff] }
   0x6   :  { %3012 = vmatprep.subr.bf16.mxu1 %v3011_v30  ;;  %v3015_v36 = vpack.c.bf16 %v241_v35, %v240_v34  ;;  %v136_v38 = vld [vmem:[%s4357_s4 + $0x18] sm:$0xff]  ;;  %v243_v41 = vld [vmem:[%s4358_s5 + $0x28] sm:$0xff]  ;;  %v137_v43 = vld [vmem:[%s4357_s4 + $0x20] sm:$0xff] }
   0x7   :  { %60 = vadd.xlane.f32.xlu0 %v59_v6  ;;  %66 = vadd.xlane.f32.xlu1 %v65_v7  ;;  %v2999_v39 = vpack.c.bf16 %v136_v38, %v135_v37  ;;  %v3019_v42 = vpack.c.bf16 %v243_v41, %v242_v40  ;;  %v138_v44 = vld [vmem:[%s4357_s4 + $0x28] sm:$0xff]  ;;  %v244_v46 = vld [vmem:[%s4358_s5 + $0x30] sm:$0xff]  ;;  %v245_v47 = vld [vmem:[%s4358_s5 + $0x38] sm:$0xff] }
   0x8   :  { %2996 = vmatprep.subr.bf16.mxu0 %v2995_v33  ;;  %3014 = vmatpush3.bf16.msra.mxu1 %v3011_v30  ;;  %v3003_v45 = vpack.c.bf16 %v138_v44, %v137_v43  ;;  %v3023_v48 = vpack.c.bf16 %v245_v47, %v244_v46  ;;  %v139_v49 = vld [vmem:[%s4357_s4 + $0x30] sm:$0xff]  ;;  %v140_v50 = vld [vmem:[%s4357_s4 + $0x38] sm:$0xff]  ;;  %v449_v52 = vld [vmem:[%s4356_s3] sm:$0xff] }
   0x9   :  { %2998 = vmatpush3.bf16.msra.mxu0 %v2995_v33  ;;  %3016 = vmatprep.subr.bf16.mxu1 %v3015_v36  ;;  %v3007_v51 = vpack.c.bf16 %v140_v50, %v139_v49  ;;  %v450_v53 = vld [vmem:[%s4356_s3 + $0x8] sm:$0xff]  ;;  %v131_v55 = vld [vmem:[%s4362_s9] sm:$0xff]  ;;  %v455_v30 = vld [vmem:[%s4356_s3 + $0x30] sm:$0xff] }
   0xa   :  { %3000 = vmatprep.subr.bf16.mxu0 %v2999_v39  ;;  %v3031_v54 = vpack.c.bf16 %v450_v53, %v449_v52  ;;  %v132_v56 = vld [vmem:[%s4362_s9 + $0x8] sm:$0xff]  ;;  %v2385_v7 = vld [vmem:[%s4354_s1] ss:$0 sm:$0xff]  ;;  %v456_v31 = vld [vmem:[%s4356_s3 + $0x38] sm:$0xff] }
   0xb   :  { %v3497_v57 = vpack.c.bf16 %v132_v56, %v131_v55  ;;  %v3043_v32 = vpack.c.bf16 %v456_v31, %v455_v30  ;;  %v2415_v33 = vld [vmem:[%s4356_s3 + $0x80] sm:$0xff]  ;;  %v2416_v34 = vld [vmem:[%s4356_s3 + $0x88] sm:$0xff]  ;;  %v2418_v37 = vld [vmem:[%s4356_s3 + $0x98] sm:$0xff] }
   0xc   :  { %3018 = vmatpush3.bf16.msra.mxu1 %v3015_v36  ;;  %v3063_v35 = vpack.c.bf16 %v2416_v34, %v2415_v33  ;;  %v2417_v36 = vld [vmem:[%s4356_s3 + $0x90] sm:$0xff]  ;;  %v2420_v40 = vld [vmem:[%s4356_s3 + $0xa8] sm:$0xff]  ;;  %v2422_v43 = vld [vmem:[%s4356_s3 + $0xb8] sm:$0xff] }
   0xd   :  { %3002 = vmatpush3.bf16.msra.mxu0 %v2999_v39  ;;  %3020 = vmatprep.subr.bf16.mxu1 %v3019_v42  ;;  %v3067_v38 = vpack.c.bf16 %v2418_v37, %v2417_v36  ;;  %v2419_v39 = vld [vmem:[%s4356_s3 + $0xa0] sm:$0xff]  ;;  %v2404_v46 = vld [vmem:[%s4356_s3 + $0x48] sm:$0xff]  ;;  %v2406_v49 = vld [vmem:[%s4356_s3 + $0x58] sm:$0xff] }
   0xe   :  { %3004 = vmatprep.subr.bf16.mxu0 %v3003_v45  ;;  %v3071_v41 = vpack.c.bf16 %v2420_v40, %v2419_v39  ;;  %v2407_v56 = vld [vmem:[%s4356_s3 + $0x60] sm:$0xff]  ;;  %v334_v36 = vld [vmem:[%s4365_s12 + $0x18] sm:$0xff]  ;;  %v333_v39 = vld [vmem:[%s4365_s12 + $0x10] sm:$0xff] }
   0xf   :  { %v437_v30 = vld [vmem:[%s4366_s13] sm:$0xff]  ;;  %vm3100_vm2 = vmpackc.low %vm339_vm1, %vm339_vm1 }
  0x10   :  { %3022 = vmatpush3.bf16.msra.mxu1 %v3019_v42  ;;  %v2421_v42 = vld [vmem:[%s4356_s3 + $0xb0] sm:$0xff] }
  0x11   :  { %3006 = vmatpush3.bf16.msra.mxu0 %v3003_v45  ;;  %3024 = vmatprep.subr.bf16.mxu1 %v3023_v48  ;;  %v3075_v44 = vpack.c.bf16 %v2422_v43, %v2421_v42  ;;  %v2403_v45 = vld [vmem:[%s4356_s3 + $0x40] sm:$0xff] }
  0x12   :  { %3008 = vmatprep.subr.bf16.mxu0 %v3007_v51  ;;  %v3047_v47 = vpack.c.bf16 %v2404_v46, %v2403_v45 }
  0x14   :  { %3026 = vmatpush3.bf16.msra.mxu1 %v3023_v48  ;;  %v2405_v48 = vld [vmem:[%s4356_s3 + $0x50] sm:$0xff] }
  0x15   :  { %3010 = vmatpush3.bf16.msra.mxu0 %v3007_v51  ;;  %3032 = vmatprep.subr.bf16.mxu1 %v3031_v54 }
  0x16   :  { %3028 = vmatprep.subr.bf16.mxu0 %v3497_v57 }
  0x90   :  { %v58_v8 = vpop.xlane.xlu0 %57  ;;  %v64_v9 = vpop.xlane.xlu1 %63 }
  0x91   :  { %v69_v10 = vmul.f32 0.015625, %v58_v8  ;;  %v71_v11 = vmul.f32 0.015625, %v64_v9  ;;  %v2386_v9 = vld [vmem:[%s4355_s2] ss:$0 sm:$0xff] }
  0x93   :  { %v3417_v12 = vsub.f32 %v51_v0, %v69_v10  ;;  %v3419_v13 = vsub.f32 %v53_v1, %v71_v11 }
  0x94   :  { %v61_v14 = vpop.xlane.xlu0 %60  ;;  %v67_v15 = vpop.xlane.xlu1 %66 }
  0x95   :  { %v70_v16 = vmul.f32 0.015625, %v61_v14  ;;  %v72_v17 = vmul.f32 0.015625, %v67_v15  ;;  %v77_v18 = vmul.f32 %v3417_v12, %v3417_v12  ;;  %v79_v19 = vmul.f32 %v3419_v13, %v3419_v13 }
  0x97   :  { %v3425_v20 = vsub.f32 %v52_v2, %v70_v16  ;;  %v3427_v21 = vsub.f32 %v54_v5, %v72_v17  ;;  %v81_v22 = vsel %vm55_vm0, %v77_v18, 0.0  ;;  %v87_v23 = vsel %vm55_vm0, %v79_v19, 0.0  ;;  %v451_v18 = vld [vmem:[%s4356_s3 + $0x10] sm:$0xff] }
  0x98   :  { %82 = vadd.xlane.f32.xlu0 %v81_v22 }
  0x99   :  { %v78_v24 = vmul.f32 %v3425_v20, %v3425_v20  ;;  %v80_v25 = vmul.f32 %v3427_v21, %v3427_v21 }
  0x9b   :  { %v84_v26 = vsel %vm55_vm0, %v78_v24, 0.0  ;;  %v90_v27 = vsel %vm55_vm0, %v80_v25, 0.0 }
  0x9c   :  { %88 = vadd.xlane.f32.xlu0 %v87_v23  ;;  %85 = vadd.xlane.f32.xlu1 %v84_v26  ;;  %v453_v26 = vld [vmem:[%s4356_s3 + $0x20] sm:$0xff] }
  0xa0   :  { %91 = vadd.xlane.f32.xlu1 %v90_v27  ;;  %v454_v27 = vld [vmem:[%s4356_s3 + $0x28] sm:$0xff] }
  0xa1   :  { %v3039_v29 = vpack.c.bf16 %v454_v27, %v453_v26 }
 0x125   :  { %v83_v58 = vpop.xlane.xlu0 %82 }
 0x126   :  { %v93_v59 = vmul.f32 0.015625, %v83_v58  ;;  %v2408_v58 = vld [vmem:[%s4356_s3 + $0x68] sm:$0xff] }
 0x128   :  { %v97_v60 = vadd.f32 1e-05, %v93_v59 }
 0x129   :  { %v86_v61 = vpop.xlane.xlu1 %85  ;;  %v89_v62 = vpop.xlane.xlu0 %88 }
 0x12a   :  { %3201 = vrsqrt.f32 %v97_v60  ;;  %v94_v63 = vmul.f32 0.015625, %v86_v61  ;;  %v95_v0 = vmul.f32 0.015625, %v89_v62 }
 0x12c   :  { %v98_v1 = vadd.f32 1e-05, %v94_v63  ;;  %v99_v2 = vadd.f32 1e-05, %v95_v0  ;;  %v3055_v63 = vpack.c.bf16 %v2408_v58, %v2407_v56 }
 0x12d   :  { %v92_v3 = vpop.xlane.xlu1 %91 }
 0x12e   :  { %3203 = vrsqrt.f32 %v98_v1  ;;  %v96_v4 = vmul.f32 0.015625, %v92_v3  ;;  %v2409_v1 = vld [vmem:[%s4356_s3 + $0x70] sm:$0xff] }
 0x12f   :  { %3205 = vrsqrt.f32 %v99_v2  ;;  %v2410_v2 = vld [vmem:[%s4356_s3 + $0x78] sm:$0xff] }
 0x130   :  { %v100_v5 = vadd.f32 1e-05, %v96_v4  ;;  %v3059_v3 = vpack.c.bf16 %v2410_v2, %v2409_v1  ;;  %v2427_v4 = vld [vmem:[%s4356_s3 + $0xc0] sm:$0xff] }
 0x132   :  { %3207 = vrsqrt.f32 %v100_v5  ;;  %v2428_v5 = vld [vmem:[%s4356_s3 + $0xc8] sm:$0xff] }
 0x134   :  { %v3202_v6 = vpop.eup %3201 }
 0x135   :  { %v105_v8 = vmul.f32 %v3202_v6, %v3417_v12  ;;  %v452_v12 = vld [vmem:[%s4356_s3 + $0x18] sm:$0xff]  ;;  %v3079_v6 = vpack.c.bf16 %v2428_v5, %v2427_v4 }
 0x136   :  { %v3035_v24 = vpack.c.bf16 %v452_v12, %v451_v18 }
 0x137   :  { %v116_v10 = vmul.f32 %v2385_v7, %v105_v8  ;;  %v2430_v8 = vld [vmem:[%s4356_s3 + $0xd8] sm:$0xff] }
 0x138   :  { %v3204_v11 = vpop.eup %3203 }
 0x139   :  { %v3206_v14 = vpop.eup %3205  ;;  %v3507_v15 = vadd.f32 %v2386_v9, %v116_v10  ;;  %v106_v16 = vmul.f32 %v3204_v11, %v3425_v20 }
 0x13a   :  { %v107_v17 = vmul.f32 %v3206_v14, %v3419_v13  ;;  %v2431_v14 = vld [vmem:[%s4356_s3 + $0xe0] sm:$0xff] }
 0x13b   :  { %v117_v19 = vmul.f32 %v2385_v7, %v106_v16  ;;  %2737 = vmatprep.mubr.msk.f32.mxu0 %vm55_vm0, %v3507_v15  ;;  %2759 = vmatprep.mubr.msk.f32.mxu1 %vm55_vm0, %v3507_v15  ;;  %v2432_v16 = vld [vmem:[%s4356_s3 + $0xe8] sm:$0xff] }
 0x13c   :  { %v3208_v22 = vpop.eup %3207  ;;  %v118_v23 = vmul.f32 %v2385_v7, %v107_v17  ;;  %v3087_v12 = vpack.c.bf16 %v2432_v16, %v2431_v14  ;;  %v824_v14 = vld [vmem:[%s4363_s10] sm:$0xff] }
 0x13d   :  { %v3521_v20 = vadd.f32 %v2386_v9, %v117_v19  ;;  %v108_v13 = vmul.f32 %v3208_v22, %v3427_v21  ;;  %v2433_v19 = vld [vmem:[%s4356_s3 + $0xf0] sm:$0xff]  ;;  %v2434_v22 = vld [vmem:[%s4356_s3 + $0xf8] sm:$0xff] }
 0x13e   :  { %v3524_v25 = vadd.f32 %v2386_v9, %v118_v23  ;;  %v3091_v23 = vpack.c.bf16 %v2434_v22, %v2433_v19 }
 0x13f   :  { %v119_v28 = vmul.f32 %v2385_v7, %v108_v13  ;;  %2738 = vmatmul.mubr.msk.f32.vlgmr.msra.gmra.mrb[0].mxu0 %vm55_vm0, %v3521_v20  ;;  %2760 = vmatmul.mubr.msk.f32.vlgmr.msra.gmra.mrb[0].mxu1 %vm55_vm0, %v3521_v20  ;;  %v2429_v7 = vld [vmem:[%s4356_s3 + $0xd0] sm:$0xff] }
 0x140   :  { %3034 = vmatpush3.bf16.msra.mxu1 %v3031_v54  ;;  %2740 = vmatprep.mubr.msk.f32.mxu0 %vm55_vm0, %v3524_v25  ;;  %v3051_v54 = vpack.c.bf16 %v2406_v49, %v2405_v48  ;;  %v3083_v11 = vpack.c.bf16 %v2430_v8, %v2429_v7 }
 0x141   :  { %v3538_v21 = vadd.f32 %v2386_v9, %v119_v28  ;;  %2762 = vmatprep.mubr.msk.f32.mxu1 %vm55_vm0, %v3524_v25  ;;  %3036 = vmatprep.subr.bf16.mxu1 %v3035_v24  ;;  %v438_v28 = vld [vmem:[%s4366_s13 + $0x8] sm:$0xff] }
 0x142   :  { %3030 = vmatpush3.bf16.msra.mxu0 %v3497_v57 }
 0x143   :  { %2741 = vmatmul.mubr.msk.f32.gmra.mrb[2].mxu0 %vm55_vm0, %v3538_v21  ;;  %2763 = vmatmul.mubr.msk.f32.gmra.mrb[2].mxu1 %vm55_vm0, %v3538_v21 }
 0x144   :  { %3038 = vmatpush3.bf16.msra.mxu1 %v3035_v24  ;;  %2791 = vmatprep.mubr.msk.f32.mxu1 %vm55_vm0, %v3507_v15 }
 0x145   :  { %3040 = vmatprep.subr.bf16.mxu1 %v3039_v29  ;;  %3048 = vmatprep.subr.bf16.mxu0 %v3047_v47 }
 0x148   :  { %3042 = vmatpush3.bf16.msra.mxu1 %v3039_v29  ;;  %v331_v29 = vld [vmem:[%s4365_s12] sm:$0xff] }
 0x149   :  { %3044 = vmatprep.subr.bf16.mxu1 %v3043_v32 }
 0x14c   :  { %3046 = vmatpush3.bf16.msra.mxu1 %v3043_v32 }
 0x14d   :  { %3064 = vmatprep.subr.bf16.mxu1 %v3063_v35 }
 0x14f   :  { %2792 = vmatmul.mubr.msk.f32.vlgmr.msra.gmra.mrb[4].mxu1 %vm55_vm0, %v3521_v20 }
 0x150   :  { %2794 = vmatprep.mubr.msk.f32.mxu1 %vm55_vm0, %v3524_v25  ;;  %3066 = vmatpush3.bf16.msra.mxu1 %v3063_v35 }
 0x151   :  { %3068 = vmatprep.subr.bf16.mxu1 %v3067_v38 }
 0x153   :  { %2795 = vmatmul.mubr.msk.f32.gmra.mrb[6].mxu1 %vm55_vm0, %v3538_v21 }
 0x154   :  { %3070 = vmatpush3.bf16.msra.mxu1 %v3067_v38  ;;  %2835 = vmatprep.mubr.msk.f32.mxu1 %vm55_vm0, %v3507_v15  ;;  %v440_v38 = vld [vmem:[%s4366_s13 + $0x18] sm:$0xff] }
 0x155   :  { %3072 = vmatprep.subr.bf16.mxu1 %v3071_v41 }
 0x158   :  { %3074 = vmatpush3.bf16.msra.mxu1 %v3071_v41  ;;  %v439_v41 = vld [vmem:[%s4366_s13 + $0x10] sm:$0xff] }
 0x159   :  { %3076 = vmatprep.subr.bf16.mxu1 %v3075_v44 }
 0x15c   :  { %3078 = vmatpush3.bf16.msra.mxu1 %v3075_v44 }
 0x15d   :  { %3183 = vmatprep.subr.bf16.mxu1 %v3497_v57 }
 0x15f   :  { %2836 = vmatmul.mubr.msk.f32.vlgmr.msra.gmra.mrb[8].mxu1 %vm55_vm0, %v3521_v20 }
 0x160   :  { %2838 = vmatprep.mubr.msk.f32.mxu1 %vm55_vm0, %v3524_v25  ;;  %3184 = vmatpush3.bf16.msra.mxu1 %v3497_v57 }
 0x163   :  { %2839 = vmatmul.mubr.msk.f32.gmra.mrb[10].mxu1 %vm55_vm0, %v3538_v21 }
 0x212   :  { %v3607_v50 = vpop.f32.mrb[0].mxu0  ;;  %v2761_v51 = vpop.f32.mrb[0].mxu1 }
 0x213   :  { %v3609_v52 = vpop.f32.mrb[1].mxu0  ;;  %v312_v53 = vpop.f32.mrb[1].mxu1 }
 0x214   :  { %v3611_v55 = vpack.c.bf16 %v2761_v51, %v312_v53  ;;  %2769 = vmatprep.mubr.msk.f32.mxu0 %vm339_vm1, %v3609_v52  ;;  %v335_v35 = vmul.f32 %v331_v29, %v3609_v52 }
 0x215   :  { %2770 = vmatmul.mubr.msk.f32.vlgmr.msra.gmra.mrb[4].mxu0 %vm339_vm1, %v3607_v50 }
 0x216   :  { %3050 = vmatpush3.bf16.msra.mxu0 %v3047_v47  ;;  %v3623_v59 = vpop.f32.mrb[2].mxu0  ;;  %v2764_v60 = vpop.f32.mrb[2].mxu1  ;;  %3112 = vmatprep.subr.bf16.mxu1 %v3611_v55 }
 0x217   :  { %v3626_v61 = vpop.f32.mrb[3].mxu0  ;;  %v322_v62 = vpop.f32.mrb[3].mxu1  ;;  %3052 = vmatprep.subr.bf16.mxu0 %v3051_v54  ;;  %v338_v44 = vmul.f32 %v3623_v59, %v334_v36 }
 0x218   :  { %v3115_v0 = vpack.c.bf16 %v2764_v60, %v322_v62  ;;  %2772 = vmatprep.mubr.msk.f32.mxu0 %vm339_vm1, %v3626_v61  ;;  %v337_v47 = vmul.f32 %v333_v39, %v3626_v61  ;;  %v835_v60 = vld [vmem:[%s4363_s10 + $0x58] sm:$0xff]  ;;  %v834_v62 = vld [vmem:[%s4363_s10 + $0x50] sm:$0xff] }
 0x219   :  { %2773 = vmatmul.mubr.msk.f32.gmra.mrb[6].mxu0 %vm339_vm1, %v3623_v59  ;;  %v1060_v61 = vld [vmem:[%s4364_s11 + $0x58] sm:$0xff] }
 0x21a   :  { %3054 = vmatpush3.bf16.msra.mxu0 %v3051_v54  ;;  %2813 = vmatprep.mubr.msk.f32.mxu0 %vm55_vm0, %v3507_v15 }
 0x21b   :  { %3056 = vmatprep.subr.bf16.mxu0 %v3055_v63 }
 0x21e   :  { %3058 = vmatpush3.bf16.msra.mxu0 %v3055_v63  ;;  %v1059_v63 = vld [vmem:[%s4364_s11 + $0x50] sm:$0xff] }
 0x21f   :  { %3060 = vmatprep.subr.bf16.mxu0 %v3059_v3 }
 0x222   :  { %v3652_v9 = vpop.f32.mrb[4].mxu1  ;;  %3062 = vmatpush3.bf16.msra.mxu0 %v3059_v3 }
 0x223   :  { %v3654_v10 = vpop.f32.mrb[5].mxu1  ;;  %3080 = vmatprep.subr.bf16.mxu0 %v3079_v6 }
 0x225   :  { %2814 = vmatmul.mubr.msk.f32.vlgmr.msra.gmra.mrb[8].mxu0 %vm55_vm0, %v3521_v20 }
 0x226   :  { %v3664_v17 = vpop.f32.mrb[6].mxu1  ;;  %2816 = vmatprep.mubr.msk.f32.mxu0 %vm55_vm0, %v3524_v25  ;;  %3082 = vmatpush3.bf16.msra.mxu0 %v3079_v6  ;;  %v825_v6 = vld [vmem:[%s4363_s10 + $0x8] sm:$0xff] }
 0x227   :  { %v3668_v18 = vpop.f32.mrb[7].mxu1  ;;  %3084 = vmatprep.subr.bf16.mxu0 %v3083_v11 }
 0x229   :  { %2817 = vmatmul.mubr.msk.f32.gmra.mrb[10].mxu0 %vm55_vm0, %v3538_v21 }
 0x22a   :  { %3086 = vmatpush3.bf16.msra.mxu0 %v3083_v11  ;;  %2857 = vmatprep.mubr.msk.f32.mxu0 %vm55_vm0, %v3507_v15  ;;  %v1050_v11 = vld [vmem:[%s4364_s11 + $0x8] sm:$0xff] }
 0x22b   :  { %3088 = vmatprep.subr.bf16.mxu0 %v3087_v12 }
 0x22e   :  { %3090 = vmatpush3.bf16.msra.mxu0 %v3087_v12  ;;  %v1049_v12 = vld [vmem:[%s4364_s11] sm:$0xff] }
 0x22f   :  { %3092 = vmatprep.subr.bf16.mxu0 %v3091_v23 }
 0x232   :  { %v3680_v13 = vpop.f32.mrb[8].mxu1  ;;  %3094 = vmatpush3.bf16.msra.mxu0 %v3091_v23  ;;  %v841_v23 = vmul.f32 %v3652_v9, %v825_v6  ;;  %v832_v6 = vld [vmem:[%s4363_s10 + $0x40] sm:$0xff] }
 0x233   :  { %v3682_v24 = vpop.f32.mrb[9].mxu1  ;;  %3096 = vmatprep.subr.bf16.mxu0 %v3497_v57 }
 0x235   :  { %2858 = vmatmul.mubr.msk.f32.vlgmr.msra.gmra.mrb[12].mxu0 %vm55_vm0, %v3521_v20 }
 0x236   :  { %v3687_v26 = vpop.f32.mrb[10].mxu1  ;;  %2860 = vmatprep.mubr.msk.f32.mxu0 %vm55_vm0, %v3524_v25  ;;  %3098 = vmatpush3.bf16.msra.mxu0 %v3497_v57  ;;  %v332_v57 = vld [vmem:[%s4365_s12 + $0x8] sm:$0xff] }
 0x237   :  { %v3692_v27 = vpop.f32.mrb[11].mxu1  ;;  %v336_v32 = vmul.f32 %v3607_v50, %v332_v57  ;;  %v851_v2 = vmul.f32 %v3687_v26, %v835_v60  ;;  %v840_v57 = vmul.f32 %v824_v14, %v3654_v10 }
 0x238   :  { %2882 = vmatprep.mubr.msk.f32.mxu1 %vm339_vm1, %v3692_v27  ;;  %v850_v7 = vmul.f32 %v834_v62, %v3692_v27 }
 0x239   :  { %2861 = vmatmul.mubr.msk.f32.gmra.mrb[14].mxu0 %vm55_vm0, %v3538_v21  ;;  %2883 = vmatmul.mubr.msk.f32.vlgmr.msra.gmra.mrb[12].mxu1 %vm339_vm1, %v3687_v26 }
 0x23a   :  { %3114 = vmatpush3.bf16.msra.mxu1 %v3611_v55  ;;  %2867 = vmatprep.mubr.msk.f32.mxu0 %vm339_vm1, %v3654_v10 }
 0x23b   :  { %3116 = vmatprep.subr.bf16.mxu1 %v3115_v0 }
 0x23d   :  { %2868 = vmatmul.mubr.msk.f32.vlgmr.msra.gmra.mrb[16].mxu0 %vm339_vm1, %v3652_v9  ;;  %v1051_v9 = vld [vmem:[%s4364_s11 + $0x10] sm:$0xff] }
 0x23e   :  { %3118 = vmatpush3.bf16.msra.mxu1 %v3115_v0  ;;  %2870 = vmatprep.mubr.msk.f32.mxu0 %vm339_vm1, %v3668_v18 }
 0x241   :  { %2871 = vmatmul.mubr.msk.f32.gmra.mrb[18].mxu0 %vm339_vm1, %v3664_v17 }
 0x2e8   :  { %v2771_v31 = vpop.f32.mrb[4].mxu0 }
 0x2e9   :  { %v442_v33 = vmul.f32 %v2771_v31, %v438_v28  ;;  %v418_v34 = vpop.f32.mrb[5].mxu0  ;;  %v827_v28 = vld [vmem:[%s4363_s10 + $0x18] sm:$0xff]  ;;  %v826_v31 = vld [vmem:[%s4363_s10 + $0x10] sm:$0xff] }
 0x2ea   :  { %v441_v37 = vmul.f32 %v437_v30, %v418_v34  ;;  %v1052_v30 = vld [vmem:[%s4364_s11 + $0x18] sm:$0xff]  ;;  %v843_v34 = vmul.f32 %v3664_v17, %v827_v28  ;;  %v1054_v17 = vld [vmem:[%s4364_s11 + $0x28] sm:$0xff]  ;;  %v1061_v28 = vld [vmem:[%s4364_s11 + $0x60] sm:$0xff] }
 0x2eb   :  { %v446_v40 = vadd.f32 %v442_v33, %v336_v32 }
 0x2ec   :  { %v445_v42 = vadd.f32 %v441_v37, %v335_v35  ;;  %v2774_v43 = vpop.f32.mrb[6].mxu0  ;;  %v842_v37 = vmul.f32 %v826_v31, %v3668_v18  ;;  %v828_v18 = vld [vmem:[%s4363_s10 + $0x20] sm:$0xff] }
 0x2ed   :  { %v444_v45 = vmul.f32 %v2774_v43, %v440_v38  ;;  %v428_v46 = vpop.f32.mrb[7].mxu0 }
 0x2ee   :  { %v3099_v48 = vpack.c.bf16 %v446_v40, %v445_v42  ;;  %v443_v49 = vmul.f32 %v439_v41, %v428_v46  ;;  %v829_v41 = vld [vmem:[%s4363_s10 + $0x28] sm:$0xff]  ;;  %v1053_v42 = vld [vmem:[%s4364_s11 + $0x20] sm:$0xff] }
 0x2ef   :  { %v448_v50 = vadd.f32 %v444_v45, %v338_v44 }
 0x2f0   :  { %v447_v51 = vadd.f32 %v443_v49, %v337_v47  ;;  %3101 = vmatprep.subr.msk.bf16.mxu0 %vm3100_vm2, %v3099_v48 }
 0x2f1   :  { %3104 = vmatpush3.bf16.xpose.msk.msra.mxu0 %vm3100_vm2, %v3099_v48  ;;  %v831_v48 = vld [vmem:[%s4363_s10 + $0x38] sm:$0xff] }
 0x2f2   :  { %v3105_v52 = vpack.c.bf16 %v448_v50, %v447_v51  ;;  %v1056_v50 = vld [vmem:[%s4364_s11 + $0x38] sm:$0xff]  ;;  %v830_v51 = vld [vmem:[%s4363_s10 + $0x30] sm:$0xff] }
 0x2f4   :  { %3107 = vmatprep.subr.msk.bf16.mxu0 %vm3100_vm2, %v3105_v52 }
 0x2f8   :  { %v3739_v53 = vpop.f32.mrb[8].mxu0 }
 0x2f9   :  { %v3741_v54 = vpop.f32.mrb[9].mxu0  ;;  %3110 = vmatpush3.bf16.xpose.msk.msra.mxu0 %vm3100_vm2, %v3105_v52  ;;  %v845_v44 = vmul.f32 %v3739_v53, %v829_v41 }
 0x2fa   :  { %2873 = vmatprep.mubr.msk.f32.mxu0 %vm339_vm1, %v3741_v54  ;;  %v844_v47 = vmul.f32 %v828_v18, %v3741_v54 }
 0x2fb   :  { %2874 = vmatmul.mubr.msk.f32.gmra.mrb[20].mxu0 %vm339_vm1, %v3739_v53  ;;  %v1055_v53 = vld [vmem:[%s4364_s11 + $0x30] sm:$0xff] }
 0x2fc   :  { %v3747_v55 = vpop.f32.mrb[10].mxu0 }
 0x2fd   :  { %v3749_v56 = vpop.f32.mrb[11].mxu0 }
 0x2fe   :  { %2876 = vmatprep.mubr.msk.f32.mxu0 %vm339_vm1, %v3749_v56 }
 0x2ff   :  { %2877 = vmatmul.mubr.msk.f32.gmra.mrb[22].mxu0 %vm339_vm1, %v3747_v55 }
 0x300   :  { %2879 = vmatprep.mubr.msk.f32.mxu0 %vm339_vm1, %v3682_v24 }
 0x303   :  { %2880 = vmatmul.mubr.msk.f32.gmra.mrb[24].mxu0 %vm339_vm1, %v3680_v13 }
 0x308   :  { %v3759_v58 = vpop.f32.mrb[12].mxu0 }
 0x309   :  { %v3761_v59 = vpop.f32.mrb[13].mxu0 }
 0x30a   :  { %2885 = vmatprep.mubr.msk.f32.mxu1 %vm339_vm1, %v3761_v59 }
 0x30b   :  { %2886 = vmatmul.mubr.msk.f32.gmra.mrb[14].mxu1 %vm339_vm1, %v3759_v58 }
 0x30c   :  { %v3779_v0 = vpop.f32.mrb[14].mxu0  ;;  %v2884_v1 = vpop.f32.mrb[12].mxu1 }
 0x30d   :  { %v1076_v3 = vmul.f32 %v2884_v1, %v1060_v61  ;;  %v3782_v4 = vpop.f32.mrb[15].mxu0  ;;  %v1020_v5 = vpop.f32.mrb[13].mxu1  ;;  %v847_v61 = vmul.f32 %v3747_v55, %v831_v48  ;;  %v833_v1 = vld [vmem:[%s4363_s10 + $0x48] sm:$0xff] }
 0x30e   :  { %v1075_v8 = vmul.f32 %v1059_v63, %v1020_v5  ;;  %2888 = vmatprep.mubr.msk.f32.mxu1 %vm339_vm1, %v3782_v4  ;;  %v1058_v5 = vld [vmem:[%s4364_s11 + $0x48] sm:$0xff] }
 0x30f   :  { %v3796_v16 = vadd.f32 %v1076_v3, %v851_v2  ;;  %2889 = vmatmul.mubr.msk.f32.gmra.mrb[16].mxu1 %vm339_vm1, %v3779_v0  ;;  %v846_v2 = vmul.f32 %v830_v51, %v3749_v56 }
 0x310   :  { %v3803_v19 = vadd.f32 %v1075_v8, %v850_v7  ;;  %v2869_v22 = vpop.f32.mrb[16].mxu0  ;;  %v1057_v7 = vld [vmem:[%s4364_s11 + $0x40] sm:$0xff] }
 0x311   :  { %v1066_v26 = vmul.f32 %v2869_v22, %v1050_v11  ;;  %v970_v27 = vpop.f32.mrb[17].mxu0  ;;  %v849_v11 = vmul.f32 %v3680_v13, %v833_v1  ;;  %v848_v22 = vmul.f32 %v832_v6, %v3682_v24  ;;  %v1062_v13 = vld [vmem:[%s4364_s11 + $0x68] sm:$0xff]  ;;  %v836_v24 = vld [vmem:[%s4363_s10 + $0x60] sm:$0xff]  ;;  %v1104_v6 = vld [vmem:[%s4367_s14 + $0x38] sm:$0xff] }
 0x312   :  { %v1065_v29 = vmul.f32 %v1049_v12, %v970_v27 }
 0x313   :  { %v1082_v32 = vadd.f32 %v1066_v26, %v841_v23 }
 0x314   :  { %v1081_v33 = vadd.f32 %v1065_v29, %v840_v57  ;;  %v2872_v10 = vpop.f32.mrb[18].mxu0  ;;  %v837_v57 = vld [vmem:[%s4363_s10 + $0x68] sm:$0xff] }
 0x315   :  { %v1068_v35 = vmul.f32 %v2872_v10, %v1052_v30  ;;  %v980_v36 = vpop.f32.mrb[19].mxu0  ;;  %v853_v30 = vmul.f32 %v3759_v58, %v837_v57  ;;  %v1063_v58 = vld [vmem:[%s4364_s11 + $0x70] sm:$0xff] }
 0x316   :  { %v1067_v38 = vmul.f32 %v1051_v9, %v980_v36  ;;  %2899 = vmatprep.mubr.msk.f32.mxu0 %vm339_vm1, %v1081_v33  ;;  %v852_v9 = vmul.f32 %v836_v24, %v3761_v59  ;;  %v839_v33 = vld [vmem:[%s4363_s10 + $0x78] sm:$0xff] }
 0x317   :  { %v1084_v39 = vadd.f32 %v1068_v35, %v843_v34  ;;  %2900 = vmatmul.mubr.msk.f32.vlgmr.msra.gmra.mrb[26].mxu0 %vm339_vm1, %v1082_v32  ;;  %v1064_v34 = vld [vmem:[%s4364_s11 + $0x78] sm:$0xff]  ;;  %v838_v35 = vld [vmem:[%s4363_s10 + $0x70] sm:$0xff] }
 0x318   :  { %v1083_v40 = vadd.f32 %v1067_v38, %v842_v37  ;;  %v855_v37 = vmul.f32 %v3779_v0, %v839_v33  ;;  %v1097_v0 = vld [vmem:[%s4367_s14] sm:$0xff] }
 0x31a   :  { %2902 = vmatprep.mubr.msk.f32.mxu0 %vm339_vm1, %v1083_v40  ;;  %v854_v40 = vmul.f32 %v838_v35, %v3782_v4 }
 0x31b   :  { %2903 = vmatmul.mubr.msk.f32.gmra.mrb[28].mxu0 %vm339_vm1, %v1084_v39 }
 0x3ce   :  { %v2875_v43 = vpop.f32.mrb[20].mxu0 }
 0x3cf   :  { %v1070_v45 = vmul.f32 %v2875_v43, %v1054_v17  ;;  %v990_v46 = vpop.f32.mrb[21].mxu0 }
 0x3d0   :  { %v1069_v49 = vmul.f32 %v1053_v42, %v990_v46 }
 0x3d1   :  { %v1086_v52 = vadd.f32 %v1070_v45, %v845_v44  ;;  %v1100_v45 = vld [vmem:[%s4367_s14 + $0x18] sm:$0xff] }
 0x3d2   :  { %v1085_v60 = vadd.f32 %v1069_v49, %v844_v47  ;;  %v2878_v54 = vpop.f32.mrb[22].mxu0  ;;  %v1099_v47 = vld [vmem:[%s4367_s14 + $0x10] sm:$0xff] }
 0x3d3   :  { %v1072_v62 = vmul.f32 %v2878_v54, %v1056_v50  ;;  %v1000_v63 = vpop.f32.mrb[23].mxu0  ;;  %v1102_v54 = vld [vmem:[%s4367_s14 + $0x28] sm:$0xff] }
 0x3d4   :  { %v1071_v3 = vmul.f32 %v1055_v53, %v1000_v63  ;;  %2905 = vmatprep.mubr.msk.f32.mxu0 %vm339_vm1, %v1085_v60 }
 0x3d5   :  { %v1088_v55 = vadd.f32 %v1072_v62, %v847_v61  ;;  %2906 = vmatmul.mubr.msk.f32.gmra.mrb[30].mxu0 %vm339_vm1, %v1086_v52  ;;  %v1101_v61 = vld [vmem:[%s4367_s14 + $0x20] sm:$0xff] }
 0x3d6   :  { %v1087_v8 = vadd.f32 %v1071_v3, %v846_v2  ;;  %v2881_v56 = vpop.f32.mrb[24].mxu0 }
 0x3d7   :  { %v1074_v14 = vmul.f32 %v2881_v56, %v1058_v5  ;;  %v1010_v12 = vpop.f32.mrb[25].mxu0 }
 0x3d8   :  { %v1073_v23 = vmul.f32 %v1057_v7, %v1010_v12  ;;  %2908 = vmatprep.mubr.msk.f32.mxu0 %vm339_vm1, %v1087_v8  ;;  %v1103_v7 = vld [vmem:[%s4367_s14 + $0x30] sm:$0xff] }
 0x3d9   :  { %v1090_v26 = vadd.f32 %v1074_v14, %v849_v11  ;;  %2909 = vmatmul.mubr.msk.f32.gmra.mrb[32].mxu0 %vm339_vm1, %v1088_v55 }
 0x3da   :  { %v1089_v27 = vadd.f32 %v1073_v23, %v848_v22  ;;  %v1106_v23 = vld [vmem:[%s4367_s14 + $0x48] sm:$0xff] }
 0x3dc   :  { %2911 = vmatprep.mubr.msk.f32.mxu0 %vm339_vm1, %v1089_v27 }
 0x3dd   :  { %2912 = vmatmul.mubr.msk.f32.gmra.mrb[34].mxu0 %vm339_vm1, %v1090_v26 }
 0x3de   :  { %v2887_v29 = vpop.f32.mrb[14].mxu1  ;;  %2914 = vmatprep.mubr.msk.f32.mxu0 %vm339_vm1, %v3803_v19 }
 0x3df   :  { %v1078_v31 = vmul.f32 %v2887_v29, %v1062_v13  ;;  %v1030_v32 = vpop.f32.mrb[15].mxu1  ;;  %v1105_v13 = vld [vmem:[%s4367_s14 + $0x40] sm:$0xff] }
 0x3e0   :  { %v1077_v10 = vmul.f32 %v1061_v28, %v1030_v32 }
 0x3e1   :  { %v1094_v19 = vadd.f32 %v1078_v31, %v853_v30  ;;  %2915 = vmatmul.mubr.msk.f32.gmra.mrb[36].mxu0 %vm339_vm1, %v3796_v16  ;;  %v1098_v16 = vld [vmem:[%s4367_s14 + $0x8] sm:$0xff] }
 0x3e2   :  { %v1093_v59 = vadd.f32 %v1077_v10, %v852_v9  ;;  %v2890_v36 = vpop.f32.mrb[16].mxu1  ;;  %v1108_v10 = vld [vmem:[%s4367_s14 + $0x58] sm:$0xff] }
 0x3e3   :  { %v1080_v38 = vmul.f32 %v2890_v36, %v1064_v34  ;;  %v1040_v39 = vpop.f32.mrb[17].mxu1 }
 0x3e4   :  { %v1079_v41 = vmul.f32 %v1063_v58, %v1040_v39  ;;  %2917 = vmatprep.mubr.msk.f32.mxu0 %vm339_vm1, %v1093_v59  ;;  %v1107_v58 = vld [vmem:[%s4367_s14 + $0x50] sm:$0xff] }
 0x3e5   :  { %v1096_v17 = vadd.f32 %v1080_v38, %v855_v37  ;;  %2918 = vmatmul.mubr.msk.f32.gmra.mrb[38].mxu0 %vm339_vm1, %v1094_v19 }
 0x3e6   :  { %v1095_v18 = vadd.f32 %v1079_v41, %v854_v40  ;;  %v1110_v41 = vld [vmem:[%s4367_s14 + $0x68] sm:$0xff] }
 0x3e8   :  { %2920 = vmatprep.mubr.msk.f32.mxu0 %vm339_vm1, %v1095_v18 }
 0x3e9   :  { %2921 = vmatmul.mubr.msk.f32.gmra.mrb[40].mxu0 %vm339_vm1, %v1096_v17 }
 0x3ea   :  { %v2901_v4 = vpop.f32.mrb[26].mxu0 }
 0x3eb   :  { %v1245_v42 = vadd.f32 %v2901_v4, %v1098_v16  ;;  %v1239_v43 = vpop.f32.mrb[27].mxu0  ;;  %v1109_v16 = vld [vmem:[%s4367_s14 + $0x60] sm:$0xff] }
 0x3ec   :  { %v1240_v44 = vadd.f32 %v1239_v43, %v1097_v0 }
 0x3ed   :  { %v1322_v46 = vsel %vm1318_vm3, %v1245_v42, -inf }
 0x3ee   :  { %1323 = vmax.xlane.f32.xlu1 %v1322_v46  ;;  %v2904_v48 = vpop.f32.mrb[28].mxu0  ;;  %v1319_v49 = vsel %vm1318_vm3, %v1240_v44, -inf }
 0x3ef   :  { %v1255_v50 = vadd.f32 %v2904_v48, %v1100_v45  ;;  %v1249_v51 = vpop.f32.mrb[29].mxu0  ;;  %1320 = vmax.xlane.f32.xlu0 %v1319_v49  ;;  %v1112_v45 = vld [vmem:[%s4367_s14 + $0x78] sm:$0xff] }
 0x3f0   :  { %v1250_v52 = vadd.f32 %v1249_v51, %v1099_v47  ;;  %v1111_v47 = vld [vmem:[%s4367_s14 + $0x70] sm:$0xff] }
 0x3f1   :  { %v1328_v53 = vsel %vm1318_vm3, %v1255_v50, -inf }
 0x3f2   :  { %1329 = vmax.xlane.f32.xlu1 %v1328_v53  ;;  %v1325_v60 = vsel %vm1318_vm3, %v1250_v52, -inf }
 0x3f3   :  { %1326 = vmax.xlane.f32.xlu0 %v1325_v60 }
 0x47b   :  { %v1324_v63 = vpop.xlane.xlu1 %1323 }
 0x47c   :  { %v1321_v3 = vpop.xlane.xlu0 %1320  ;;  %v1368_v12 = vsub.f32 %v1245_v42, %v1324_v63 }
 0x47d   :  { %v1367_v26 = vsub.f32 %v1240_v44, %v1321_v3 }
 0x47e   :  { %v1385_v32 = vmul.f32 1.442695, %v1368_v12 }
 0x47f   :  { %v1330_v27 = vpop.xlane.xlu1 %1329  ;;  %v1383_v34 = vmul.f32 1.442695, %v1367_v26 }
 0x480   :  { %v1327_v24 = vpop.xlane.xlu0 %1326  ;;  %v1370_v9 = vsub.f32 %v1255_v50, %v1330_v27  ;;  %3209 = vpow2.f32 %v1385_v32 }
 0x481   :  { %v1369_v35 = vsub.f32 %v1250_v52, %v1327_v24  ;;  %3211 = vpow2.f32 %v1383_v34 }
 0x482   :  { %v1389_v39 = vmul.f32 1.442695, %v1370_v9 }
 0x483   :  { %v1387_v17 = vmul.f32 1.442695, %v1369_v35 }
 0x484   :  { %3213 = vpow2.f32 %v1389_v39 }
 0x485   :  { %3215 = vpow2.f32 %v1387_v17 }
 0x48a   :  { %v4007_v60 = vpop.eup %3209 }
 0x4a8   :  { %v2907_v62 = vpop.f32.mrb[30].mxu0 }
 0x4a9   :  { %v3931_v1 = vadd.f32 %v2907_v62, %v1102_v54  ;;  %v1259_v2 = vpop.f32.mrb[31].mxu0  ;;  %v1418_v62 = vsel %vm1318_vm3, %v4007_v60, 0.0 }
 0x4aa   :  { %v3933_v5 = vadd.f32 %v1259_v2, %v1101_v61  ;;  %v4011_v61 = vpop.eup %3211 }
 0x4ab   :  { %v1334_v55 = vsel %vm1318_vm3, %v3931_v1, -inf  ;;  %v4015_v63 = vpop.eup %3213  ;;  %v1415_v2 = vsel %vm1318_vm3, %v4011_v61, 0.0 }
 0x4ac   :  { %1335 = vmax.xlane.f32.xlu1 %v1334_v55  ;;  %v2910_v8 = vpop.f32.mrb[32].mxu0  ;;  %v1331_v56 = vsel %vm1318_vm3, %v3933_v5, -inf  ;;  %v4019_v3 = vpop.eup %3215 }
 0x4ad   :  { %v3945_v11 = vadd.f32 %v2910_v8, %v1104_v6  ;;  %v1269_v14 = vpop.f32.mrb[33].mxu0  ;;  %1332 = vmax.xlane.f32.xlu0 %v1331_v56  ;;  %v1424_v6 = vsel %vm1318_vm3, %v4015_v63, 0.0  ;;  %v1421_v55 = vsel %vm1318_vm3, %v4019_v3, 0.0 }
 0x4ae   :  { %v3947_v22 = vadd.f32 %v1269_v14, %v1103_v7 }
 0x4af   :  { %v1340_v57 = vsel %vm1318_vm3, %v3945_v11, -inf }
 0x4b0   :  { %1341 = vmax.xlane.f32.xlu1 %v1340_v57  ;;  %v2913_v28 = vpop.f32.mrb[34].mxu0  ;;  %v1337_v29 = vsel %vm1318_vm3, %v3947_v22, -inf }
 0x4b1   :  { %v3959_v30 = vadd.f32 %v2913_v28, %v1106_v23  ;;  %v1279_v31 = vpop.f32.mrb[35].mxu0  ;;  %1338 = vmax.xlane.f32.xlu0 %v1337_v29 }
 0x4b2   :  { %v3961_v33 = vadd.f32 %v1279_v31, %v1105_v13 }
 0x4b3   :  { %v1346_v19 = vsel %vm1318_vm3, %v3959_v30, -inf }
 0x4b4   :  { %1347 = vmax.xlane.f32.xlu1 %v1346_v19  ;;  %v2916_v59 = vpop.f32.mrb[36].mxu0  ;;  %v1343_v36 = vsel %vm1318_vm3, %v3961_v33, -inf }
 0x4b5   :  { %v3973_v37 = vadd.f32 %v2916_v59, %v1108_v10  ;;  %v1289_v38 = vpop.f32.mrb[37].mxu0  ;;  %1344 = vmax.xlane.f32.xlu0 %v1343_v36 }
 0x4b6   :  { %v3975_v40 = vadd.f32 %v1289_v38, %v1107_v58 }
 0x4b7   :  { %v1352_v18 = vsel %vm1318_vm3, %v3973_v37, -inf }
 0x4b8   :  { %1353 = vmax.xlane.f32.xlu1 %v1352_v18  ;;  %v2919_v0 = vpop.f32.mrb[38].mxu0  ;;  %v1349_v4 = vsel %vm1318_vm3, %v3975_v40, -inf }
 0x4b9   :  { %v3987_v42 = vadd.f32 %v2919_v0, %v1110_v41  ;;  %v1299_v43 = vpop.f32.mrb[39].mxu0  ;;  %1350 = vmax.xlane.f32.xlu0 %v1349_v4 }
 0x4ba   :  { %v3989_v44 = vadd.f32 %v1299_v43, %v1109_v16 }
 0x4bb   :  { %v1358_v46 = vsel %vm1318_vm3, %v3987_v42, -inf }
 0x4bc   :  { %1359 = vmax.xlane.f32.xlu1 %v1358_v46  ;;  %v2922_v48 = vpop.f32.mrb[40].mxu0  ;;  %v1355_v49 = vsel %vm1318_vm3, %v3989_v44, -inf }
 0x4bd   :  { %v4001_v50 = vadd.f32 %v2922_v48, %v1112_v45  ;;  %v1309_v51 = vpop.f32.mrb[41].mxu0  ;;  %1356 = vmax.xlane.f32.xlu0 %v1355_v49 }
 0x4be   :  { %v4003_v52 = vadd.f32 %v1309_v51, %v1111_v47 }
 0x4bf   :  { %v1364_v53 = vsel %vm1318_vm3, %v4001_v50, -inf }
 0x4c0   :  { %1365 = vmax.xlane.f32.xlu1 %v1364_v53  ;;  %v1361_v54 = vsel %vm1318_vm3, %v4003_v52, -inf }
 0x4c1   :  { %1362 = vmax.xlane.f32.xlu0 %v1361_v54 }
 0x4c4   :  { %1419 = vadd.xlane.f32.xlu1 %v1418_v62 }
 0x4c5   :  { %1416 = vadd.xlane.f32.xlu0 %v1415_v2 }
 0x4c8   :  { %1425 = vadd.xlane.f32.xlu1 %v1424_v6 }
 0x4c9   :  { %1422 = vadd.xlane.f32.xlu0 %v1421_v55 }
 0x539   :  { %v1336_v7 = vpop.xlane.xlu1 %1335 }
 0x53a   :  { %v1372_v8 = vsub.f32 %v3931_v1, %v1336_v7  ;;  %v1333_v56 = vpop.xlane.xlu0 %1332 }
 0x53b   :  { %v1371_v14 = vsub.f32 %v3933_v5, %v1333_v56 }
 0x53c   :  { %v1393_v12 = vmul.f32 1.442695, %v1372_v8 }
 0x53d   :  { %v1391_v23 = vmul.f32 1.442695, %v1371_v14  ;;  %v1342_v26 = vpop.xlane.xlu1 %1341 }
 0x53e   :  { %3217 = vpow2.f32 %v1393_v12  ;;  %v1374_v27 = vsub.f32 %v3945_v11, %v1342_v26  ;;  %v1339_v57 = vpop.xlane.xlu0 %1338 }
 0x53f   :  { %3219 = vpow2.f32 %v1391_v23  ;;  %v1373_v13 = vsub.f32 %v3947_v22, %v1339_v57  ;;  %v2098_v57 = vld [vmem:[%s4360_s7 + $0x18] sm:$0xff] }
 0x540   :  { %v1397_v24 = vmul.f32 1.442695, %v1374_v27  ;;  %v2096_v27 = vld [vmem:[%s4360_s7 + $0x8] sm:$0xff] }
 0x541   :  { %v1395_v28 = vmul.f32 1.442695, %v1373_v13  ;;  %v1348_v29 = vpop.xlane.xlu1 %1347 }
 0x542   :  { %3221 = vpow2.f32 %v1397_v24  ;;  %v1376_v31 = vsub.f32 %v3959_v30, %v1348_v29  ;;  %v1345_v1 = vpop.xlane.xlu0 %1344 }
 0x543   :  { %3223 = vpow2.f32 %v1395_v28  ;;  %v1375_v5 = vsub.f32 %v3961_v33, %v1345_v1  ;;  %v3135_v28 = vpack.c.bf16 %v2098_v57, %v2096_v27  ;;  %v2095_v1 = vld [vmem:[%s4360_s7] sm:$0xff] }
 0x544   :  { %v1401_v32 = vmul.f32 1.442695, %v1376_v31 }
 0x545   :  { %v1399_v9 = vmul.f32 1.442695, %v1375_v5  ;;  %v1354_v10 = vpop.xlane.xlu1 %1353  ;;  %3136 = vmatprep.subr.bf16.mxu1 %v3135_v28  ;;  %v2097_v5 = vld [vmem:[%s4360_s7 + $0x10] sm:$0xff] }
 0x546   :  { %3225 = vpow2.f32 %v1401_v32  ;;  %v1378_v11 = vsub.f32 %v3973_v37, %v1354_v10  ;;  %v1351_v34 = vpop.xlane.xlu0 %1350  ;;  %v3137_v10 = vpack.c.bf16 %v2097_v5, %v2095_v1 }
 0x547   :  { %3227 = vpow2.f32 %v1399_v9  ;;  %v1377_v22 = vsub.f32 %v3975_v40, %v1351_v34 }
 0x548   :  { %v4033_v35 = vpop.eup %3217  ;;  %v1405_v19 = vmul.f32 1.442695, %v1378_v11 }
 0x549   :  { %v4035_v58 = vpop.eup %3219  ;;  %v1403_v30 = vmul.f32 1.442695, %v1377_v22  ;;  %v1360_v59 = vpop.xlane.xlu1 %1359  ;;  %v1430_v33 = vsel %vm1318_vm3, %v4033_v35, 0.0  ;;  %v2100_v22 = vld [vmem:[%s4360_s7 + $0x28] sm:$0xff] }
 0x54a   :  { %3229 = vpow2.f32 %v1405_v19  ;;  %v1380_v36 = vsub.f32 %v3987_v42, %v1360_v59  ;;  %1431 = vadd.xlane.f32.xlu1 %v1430_v33  ;;  %v1357_v38 = vpop.xlane.xlu0 %1356  ;;  %v1427_v37 = vsel %vm1318_vm3, %v4035_v58, 0.0  ;;  %v2104_v59 = vld [vmem:[%s4360_s7 + $0x48] sm:$0xff]  ;;  %v2106_v33 = vld [vmem:[%s4360_s7 + $0x58] sm:$0xff] }
 0x54b   :  { %3231 = vpow2.f32 %v1403_v30  ;;  %v1379_v39 = vsub.f32 %v3989_v44, %v1357_v38  ;;  %1428 = vadd.xlane.f32.xlu0 %v1427_v37  ;;  %v2101_v30 = vld [vmem:[%s4360_s7 + $0x30] sm:$0xff]  ;;  %v2103_v38 = vld [vmem:[%s4360_s7 + $0x40] sm:$0xff] }
 0x54c   :  { %v4043_v40 = vpop.eup %3221  ;;  %v1409_v41 = vmul.f32 1.442695, %v1380_v36  ;;  %v3143_v36 = vpack.c.bf16 %v2106_v33, %v2104_v59  ;;  %v2105_v37 = vld [vmem:[%s4360_s7 + $0x50] sm:$0xff] }
 0x54d   :  { %v4045_v17 = vpop.eup %3223  ;;  %v1407_v18 = vmul.f32 1.442695, %v1379_v39  ;;  %v1366_v16 = vpop.xlane.xlu1 %1365  ;;  %v1436_v0 = vsel %vm1318_vm3, %v4043_v40, 0.0  ;;  %v3145_v39 = vpack.c.bf16 %v2105_v37, %v2103_v38  ;;  %v2258_v33 = vld [vmem:[%s4361_s8 + $0x90] sm:$0xff] }
 0x54e   :  { %3233 = vpow2.f32 %v1409_v41  ;;  %v1382_v4 = vsub.f32 %v4001_v50, %v1366_v16  ;;  %1437 = vadd.xlane.f32.xlu1 %v1436_v0  ;;  %v1363_v42 = vpop.xlane.xlu0 %1362  ;;  %v1433_v43 = vsel %vm1318_vm3, %v4045_v17, 0.0  ;;  %v2108_v41 = vld [vmem:[%s4360_s7 + $0x68] sm:$0xff]  ;;  %v2107_v0 = vld [vmem:[%s4360_s7 + $0x60] sm:$0xff]  ;;  %v2242_v37 = vld [vmem:[%s4361_s8 + $0x10] sm:$0xff] }
 0x54f   :  { %3235 = vpow2.f32 %v1407_v18  ;;  %v1381_v44 = vsub.f32 %v4003_v52, %v1363_v42  ;;  %1434 = vadd.xlane.f32.xlu0 %v1433_v43  ;;  %v2110_v18 = vld [vmem:[%s4360_s7 + $0x78] sm:$0xff]  ;;  %v2491_v43 = vld [vmem:[%s4359_s6 + $0x10] sm:$0xff] }
 0x550   :  { %v4053_v45 = vpop.eup %3225  ;;  %v1413_v46 = vmul.f32 1.442695, %v1382_v4  ;;  %v3147_v16 = vpack.c.bf16 %v2110_v18, %v2108_v41  ;;  %v2109_v4 = vld [vmem:[%s4360_s7 + $0x70] sm:$0xff]  ;;  %v2260_v18 = vld [vmem:[%s4361_s8 + $0xa0] sm:$0xff] }
 0x551   :  { %v4055_v47 = vpop.eup %3227  ;;  %v1411_v48 = vmul.f32 1.442695, %v1381_v44  ;;  %v1420_v49 = vpop.xlane.xlu1 %1419  ;;  %v1442_v51 = vsel %vm1318_vm3, %v4053_v45, 0.0  ;;  %v3149_v42 = vpack.c.bf16 %v2109_v4, %v2107_v0  ;;  %v2492_v44 = vld [vmem:[%s4359_s6 + $0x18] sm:$0xff]  ;;  %v2244_v4 = vld [vmem:[%s4361_s8 + $0x20] sm:$0xff] }
 0x552   :  { %3237 = vpow2.f32 %v1413_v46  ;;  %1443 = vadd.xlane.f32.xlu1 %v1442_v51  ;;  %v1417_v50 = vpop.xlane.xlu0 %1416  ;;  %v1439_v53 = vsel %vm1318_vm3, %v4055_v47, 0.0  ;;  %v3119_v46 = vpack.c.bf16 %v2492_v44, %v2491_v43  ;;  %v2262_v44 = vld [vmem:[%s4361_s8 + $0xb0] sm:$0xff] }
 0x553   :  { %3239 = vpow2.f32 %v1411_v48  ;;  %1440 = vadd.xlane.f32.xlu0 %v1439_v53 }
 0x554   :  { %v4061_v52 = vpop.eup %3229  ;;  %3241 = vrcp.f32 %v1420_v49  ;;  %3120 = vmatprep.subr.bf16.mxu0 %v3119_v46 }
 0x555   :  { %v4063_v54 = vpop.eup %3231  ;;  %3243 = vrcp.f32 %v1417_v50  ;;  %v1426_v62 = vpop.xlane.xlu1 %1425  ;;  %v1448_v2 = vsel %vm1318_vm3, %v4061_v52, 0.0  ;;  %3122 = vmatpush3.bf16.msra.mxu0 %v3119_v46  ;;  %v2263_v46 = vld [vmem:[%s4361_s8 + $0xb8] sm:$0xff] }
 0x556   :  { %1449 = vadd.xlane.f32.xlu1 %v1448_v2  ;;  %v1423_v6 = vpop.xlane.xlu0 %1422  ;;  %v1445_v55 = vsel %vm1318_vm3, %v4063_v54, 0.0 }
 0x557   :  { %3245 = vrcp.f32 %v1423_v6  ;;  %1446 = vadd.xlane.f32.xlu0 %v1445_v55 }
 0x558   :  { %v4069_v7 = vpop.eup %3233  ;;  %3247 = vrcp.f32 %v1426_v62 }
 0x559   :  { %v4071_v8 = vpop.eup %3235  ;;  %v1454_v56 = vsel %vm1318_vm3, %v4069_v7, 0.0 }
 0x55a   :  { %1455 = vadd.xlane.f32.xlu1 %v1454_v56  ;;  %v1451_v14 = vsel %vm1318_vm3, %v4071_v8, 0.0 }
 0x55b   :  { %1452 = vadd.xlane.f32.xlu0 %v1451_v14 }
 0x55c   :  { %v4077_v12 = vpop.eup %3237 }
 0x55d   :  { %v4079_v23 = vpop.eup %3239  ;;  %v1460_v26 = vsel %vm1318_vm3, %v4077_v12, 0.0 }
 0x55e   :  { %v3242_v13 = vpop.eup %3241  ;;  %1461 = vadd.xlane.f32.xlu1 %v1460_v26  ;;  %v1457_v24 = vsel %vm1318_vm3, %v4079_v23, 0.0 }
 0x55f   :  { %v3244_v29 = vpop.eup %3243  ;;  %1458 = vadd.xlane.f32.xlu0 %v1457_v24  ;;  %v1480_v9 = vmul.f32 %v3242_v13, %v4007_v60  ;;  %v2102_v60 = vld [vmem:[%s4360_s7 + $0x38] sm:$0xff] }
 0x560   :  { %v1479_v31 = vmul.f32 %v3244_v29, %v4011_v61  ;;  %v3139_v19 = vpack.c.bf16 %v2102_v60, %v2100_v22  ;;  %v3317_v60 = vmov 0.0  }
 0x561   :  { %v3246_v32 = vpop.eup %3245 }
 0x562   :  { %v3248_v11 = vpop.eup %3247  ;;  %2931 = vmatprep.mubr.msk.f32.mxu1 %vm1318_vm3, %v1479_v31  ;;  %v1481_v34 = vmul.f32 %v3246_v32, %v4019_v3  ;;  %v2099_v3 = vld [vmem:[%s4360_s7 + $0x20] sm:$0xff]  ;;  %s2374_s7 = sshll.u32 %s3318_s22, 4  ;;  %s2375_s7 = int_to_ptr.vmem [resolvable:$true] %s2374_s7 }
 0x563   :  { %2932 = vmatmul.mubr.msk.f32.vlgmr.msra.gmra.mrb[18].mxu1 %vm1318_vm3, %v1480_v9  ;;  %v1482_v61 = vmul.f32 %v3248_v11, %v4015_v63  ;;  %v3141_v63 = vpack.c.bf16 %v2101_v30, %v2099_v3  ;;  %v2240_v30 = vld [vmem:[%s4361_s8] sm:$0xff]  ;;  %s3293_s24 = scalar_lea.vmem %s2375_s7, 512  ;;  %p3298_p1 = scmp.lt.s32.totalorder %s2375_s7, %s2375_s7 }
 0x564   :  { %2934 = vmatprep.mubr.msk.f32.mxu1 %vm1318_vm3, %v1481_v34  ;;  %3138 = vmatpush1.bf16.msra.mxu1 %v3137_v10  ;;  %p3294_p0 = scmp.ne.s32.totalorder %s2375_s7, %s3293_s24  ;;  %p3299_p2 = scmp.lt.s32.totalorder %s3293_s24, %s3293_s24 }
 0x565   :  { %3140 = vmatprep.subr.bf16.mxu1 %v3139_v19  ;;  %v2257_v19 = vld [vmem:[%s4361_s8 + $0x88] sm:$0xff] }
 0x566   :  { %p3300_p3 = por %p3299_p2, %p3298_p1 }
 0x567   :  { %2935 = vmatmul.mubr.msk.f32.gmra.mrb[20].mxu1 %vm1318_vm3, %v1482_v61 }
 0x568   :  { %3142 = vmatpush1.bf16.msra.mxu1 %v3141_v63  ;;  %v2241_v63 = vld [vmem:[%s4361_s8 + $0x8] sm:$0xff]  ;;  %p3301_p4 = pnand %p3300_p3, %p3294_p0 }
 0x569   :  { %3144 = vmatprep.subr.bf16.mxu1 %v3143_v36  ;;  %v3153_v59 = vpack.c.bf16 %v2241_v63, %v2240_v30  ;;  %v2259_v36 = vld [vmem:[%s4361_s8 + $0x98] sm:$0xff] }
 0x56a   :  { %v3155_v38 = vpack.c.bf16 %v2259_v36, %v2258_v33 }
 0x56c   :  { %3146 = vmatpush1.bf16.msra.mxu1 %v3145_v39  ;;  %v2243_v39 = vld [vmem:[%s4361_s8 + $0x18] sm:$0xff] }
 0x56d   :  { %3148 = vmatprep.subr.bf16.mxu1 %v3147_v16  ;;  %v3157_v41 = vpack.c.bf16 %v2243_v39, %v2242_v37  ;;  %v2261_v16 = vld [vmem:[%s4361_s8 + $0xa8] sm:$0xff] }
 0x56e   :  { %v3159_v0 = vpack.c.bf16 %v2261_v16, %v2260_v18 }
 0x570   :  { %3150 = vmatpush1.bf16.msra.mxu1 %v3149_v42  ;;  %v2245_v42 = vld [vmem:[%s4361_s8 + $0x28] sm:$0xff] }
 0x571   :  { %v3161_v43 = vpack.c.bf16 %v2245_v42, %v2244_v4 }
 0x5d7   :  { %v1432_v48 = vpop.xlane.xlu1 %1431 }
 0x5d8   :  { %3249 = vrcp.f32 %v1432_v48  ;;  %v1429_v49 = vpop.xlane.xlu0 %1428  ;;  %v3163_v48 = vpack.c.bf16 %v2263_v46, %v2262_v44 }
 0x5d9   :  { %3251 = vrcp.f32 %v1429_v49  ;;  %v2246_v49 = vld [vmem:[%s4361_s8 + $0x30] sm:$0xff] }
 0x5db   :  { %v1438_v51 = vpop.xlane.xlu1 %1437 }
 0x5dc   :  { %3253 = vrcp.f32 %v1438_v51  ;;  %v1435_v50 = vpop.xlane.xlu0 %1434  ;;  %v2247_v51 = vld [vmem:[%s4361_s8 + $0x38] sm:$0xff] }
 0x5dd   :  { %3255 = vrcp.f32 %v1435_v50  ;;  %v3165_v50 = vpack.c.bf16 %v2247_v51, %v2246_v49 }
 0x5df   :  { %v1444_v53 = vpop.xlane.xlu1 %1443 }
 0x5e0   :  { %3257 = vrcp.f32 %v1444_v53  ;;  %v1441_v62 = vpop.xlane.xlu0 %1440  ;;  %v2264_v53 = vld [vmem:[%s4361_s8 + $0xc0] sm:$0xff] }
 0x5e1   :  { %3259 = vrcp.f32 %v1441_v62  ;;  %v2265_v62 = vld [vmem:[%s4361_s8 + $0xc8] sm:$0xff] }
 0x5e2   :  { %v3250_v2 = vpop.eup %3249 }
 0x5e3   :  { %v3252_v6 = vpop.eup %3251  ;;  %v1450_v55 = vpop.xlane.xlu1 %1449  ;;  %v1484_v26 = vmul.f32 %v3250_v2, %v4033_v35  ;;  %v3167_v2 = vpack.c.bf16 %v2265_v62, %v2264_v53 }
 0x5e4   :  { %3261 = vrcp.f32 %v1450_v55  ;;  %v1447_v56 = vpop.xlane.xlu0 %1446  ;;  %v1483_v14 = vmul.f32 %v3252_v6, %v4035_v58  ;;  %v2248_v6 = vld [vmem:[%s4361_s8 + $0x40] sm:$0xff]  ;;  %v2249_v55 = vld [vmem:[%s4361_s8 + $0x48] sm:$0xff] }
 0x5e5   :  { %3263 = vrcp.f32 %v1447_v56  ;;  %v3169_v56 = vpack.c.bf16 %v2249_v55, %v2248_v6 }
 0x5e6   :  { %v3254_v27 = vpop.eup %3253  ;;  %2937 = vmatprep.mubr.msk.f32.mxu1 %vm1318_vm3, %v1483_v14  ;;  %v2266_v14 = vld [vmem:[%s4361_s8 + $0xd0] sm:$0xff] }
 0x5e7   :  { %v3256_v57 = vpop.eup %3255  ;;  %v1456_v13 = vpop.xlane.xlu1 %1455  ;;  %2938 = vmatmul.mubr.msk.f32.gmra.mrb[22].mxu1 %vm1318_vm3, %v1484_v26  ;;  %v1486_v29 = vmul.f32 %v3254_v27, %v4043_v40  ;;  %v2267_v26 = vld [vmem:[%s4361_s8 + $0xd8] sm:$0xff] }
 0x5e8   :  { %3265 = vrcp.f32 %v1456_v13  ;;  %v1453_v24 = vpop.xlane.xlu0 %1452  ;;  %v1485_v28 = vmul.f32 %v3256_v57, %v4045_v17  ;;  %v3171_v27 = vpack.c.bf16 %v2267_v26, %v2266_v14  ;;  %v2250_v57 = vld [vmem:[%s4361_s8 + $0x50] sm:$0xff]  ;;  %v2251_v13 = vld [vmem:[%s4361_s8 + $0x58] sm:$0xff] }
 0x5e9   :  { %3267 = vrcp.f32 %v1453_v24  ;;  %v3173_v24 = vpack.c.bf16 %v2251_v13, %v2250_v57 }
 0x5ea   :  { %v3258_v31 = vpop.eup %3257  ;;  %2940 = vmatprep.mubr.msk.f32.mxu1 %vm1318_vm3, %v1485_v28  ;;  %v2268_v28 = vld [vmem:[%s4361_s8 + $0xe0] sm:$0xff] }
 0x5eb   :  { %v3260_v58 = vpop.eup %3259  ;;  %v1462_v1 = vpop.xlane.xlu1 %1461  ;;  %2941 = vmatmul.mubr.msk.f32.gmra.mrb[24].mxu1 %vm1318_vm3, %v1486_v29  ;;  %v1488_v32 = vmul.f32 %v3258_v31, %v4053_v45  ;;  %v2269_v29 = vld [vmem:[%s4361_s8 + $0xe8] sm:$0xff] }
 0x5ec   :  { %3269 = vrcp.f32 %v1462_v1  ;;  %v1459_v35 = vpop.xlane.xlu0 %1458  ;;  %v1487_v5 = vmul.f32 %v3260_v58, %v4055_v47  ;;  %v3175_v31 = vpack.c.bf16 %v2269_v29, %v2268_v28  ;;  %v2252_v58 = vld [vmem:[%s4361_s8 + $0x60] sm:$0xff]  ;;  %v2253_v1 = vld [vmem:[%s4361_s8 + $0x68] sm:$0xff] }
 0x5ed   :  { %3271 = vrcp.f32 %v1459_v35  ;;  %v3177_v35 = vpack.c.bf16 %v2253_v1, %v2252_v58 }
 0x5ee   :  { %v3262_v9 = vpop.eup %3261  ;;  %2943 = vmatprep.mubr.msk.f32.mxu1 %vm1318_vm3, %v1487_v5  ;;  %v2270_v5 = vld [vmem:[%s4361_s8 + $0xf0] sm:$0xff] }
 0x5ef   :  { %v3264_v17 = vpop.eup %3263  ;;  %2944 = vmatmul.mubr.msk.f32.gmra.mrb[26].mxu1 %vm1318_vm3, %v1488_v32  ;;  %v1490_v10 = vmul.f32 %v3262_v9, %v4061_v52  ;;  %v2271_v32 = vld [vmem:[%s4361_s8 + $0xf8] sm:$0xff] }
 0x5f0   :  { %v1489_v40 = vmul.f32 %v3264_v17, %v4063_v54  ;;  %v3179_v9 = vpack.c.bf16 %v2271_v32, %v2270_v5  ;;  %v2254_v17 = vld [vmem:[%s4361_s8 + $0x70] sm:$0xff] }
 0x5f2   :  { %v3266_v11 = vpop.eup %3265  ;;  %2946 = vmatprep.mubr.msk.f32.mxu1 %vm1318_vm3, %v1489_v40  ;;  %v2255_v40 = vld [vmem:[%s4361_s8 + $0x78] sm:$0xff] }
 0x5f3   :  { %v3268_v34 = vpop.eup %3267  ;;  %2947 = vmatmul.mubr.msk.f32.gmra.mrb[28].mxu1 %vm1318_vm3, %v1490_v10  ;;  %v1492_v45 = vmul.f32 %v3266_v11, %v4069_v7  ;;  %v3181_v10 = vpack.c.bf16 %v2255_v40, %v2254_v17  ;;  %v2501_v11 = vld [vmem:[%s4359_s6 + $0x20] sm:$0xff] }
 0x5f4   :  { %v1491_v47 = vmul.f32 %v3268_v34, %v4071_v8  ;;  %v2502_v34 = vld [vmem:[%s4359_s6 + $0x28] sm:$0xff] }
 0x5f6   :  { %v3270_v61 = vpop.eup %3269  ;;  %2949 = vmatprep.mubr.msk.f32.mxu1 %vm1318_vm3, %v1491_v47 }
 0x5f7   :  { %v3272_v22 = vpop.eup %3271  ;;  %2950 = vmatmul.mubr.msk.f32.gmra.mrb[30].mxu1 %vm1318_vm3, %v1492_v45  ;;  %v1494_v52 = vmul.f32 %v3270_v61, %v4077_v12  ;;  %v3127_v61 = vpack.c.bf16 %v2502_v34, %v2501_v11 }
 0x5f8   :  { %v1493_v54 = vmul.f32 %v3272_v22, %v4079_v23 }
 0x5fa   :  { %2952 = vmatprep.mubr.msk.f32.mxu1 %vm1318_vm3, %v1493_v54 }
 0x5fb   :  { %2953 = vmatmul.mubr.msk.f32.gmra.mrb[32].mxu1 %vm1318_vm3, %v1494_v52  ;;  %v2507_v52 = vld [vmem:[%s4359_s6 + $0x30] sm:$0xff] }
 0x5fc   :  { %2175 = vmatprep.mubr.f32.mxu1 %v3317_v60 }
 0x5ff   :  { %2513 = vmatmul.mubr.msk.f32.vlgmr.msra.gmra.mrb[34].mxu1 %vm55_vm0, %v3507_v15  ;;  %v1688_v15 = vld [vmem:[%s4359_s6] sm:$0xff] }
 0x600   :  { %2181 = vmatprep.mubr.f32.mxu1 %v3317_v60 }
 0x603   :  { %2514 = vmatmul.mubr.msk.f32.gmra.mrb[36].mxu1 %vm55_vm0, %v3521_v20  ;;  %v1689_v20 = vld [vmem:[%s4359_s6 + $0x8] sm:$0xff] }
 0x604   :  { %2187 = vmatprep.mubr.f32.mxu1 %v3317_v60 }
 0x607   :  { %2515 = vmatmul.mubr.msk.f32.gmra.mrb[38].mxu1 %vm55_vm0, %v3524_v25  ;;  %v4193_v25 = vpack.c.bf16 %v1689_v20, %v1688_v15 }
 0x608   :  { %2193 = vmatprep.mubr.f32.mxu1 %v3317_v60  ;;  %v2508_v60 = vld [vmem:[%s4359_s6 + $0x38] sm:$0xff] }
 0x609   :  { %3124 = vmatprep.subr.bf16.mxu0 %v4193_v25 }
 0x60b   :  { %2516 = vmatmul.mubr.msk.f32.gmra.mrb[40].mxu1 %vm55_vm0, %v3538_v21  ;;  %v2256_v21 = vld [vmem:[%s4361_s8 + $0x80] sm:$0xff] }
 0x60c   :  { %v3151_v3 = vpack.c.bf16 %v2257_v19, %v2256_v21 }
 0x60e   :  { %3152 = vmatprep.subr.bf16.mxu1 %v3151_v3 }
 0x60f   :  { %3154 = vmatpush3.bf16.msra.mxu1 %v3153_v59 }
 0x610   :  { %3156 = vmatprep.subr.bf16.mxu1 %v3155_v38 }
 0x613   :  { %3158 = vmatpush3.bf16.msra.mxu1 %v3157_v41 }
 0x614   :  { %3160 = vmatprep.subr.bf16.mxu1 %v3159_v0 }
 0x617   :  { %3162 = vmatpush3.bf16.msra.mxu1 %v3161_v43 }
 0x618   :  { %3164 = vmatprep.subr.bf16.mxu1 %v3163_v48 }
 0x61b   :  { %3166 = vmatpush3.bf16.msra.mxu1 %v3165_v50 }
 0x61c   :  { %3168 = vmatprep.subr.bf16.mxu1 %v3167_v2 }
 0x61f   :  { %3170 = vmatpush3.bf16.msra.mxu1 %v3169_v56 }
 0x620   :  { %3172 = vmatprep.subr.bf16.mxu1 %v3171_v27 }
 0x623   :  { %3174 = vmatpush3.bf16.msra.mxu1 %v3173_v24 }
 0x624   :  { %3176 = vmatprep.subr.bf16.mxu1 %v3175_v31 }
 0x627   :  { %3178 = vmatpush3.bf16.msra.mxu1 %v3177_v35 }
 0x628   :  { %3180 = vmatprep.subr.bf16.mxu1 %v3179_v9 }
 0x62b   :  { %3182 = vmatpush3.bf16.msra.mxu1 %v3181_v10 }
 0x636   :  { %v4179_v7 = vpop.f32.mrb[18].mxu1 }
 0x637   :  { %v4181_v8 = vpop.f32.mrb[19].mxu1 }
 0x63a   :  { %v4183_v12 = vpop.f32.mrb[20].mxu1 }
 0x63b   :  { %v4185_v23 = vpop.f32.mrb[21].mxu1 }
 0x6ba   :  { %v2939_v47 = vpop.f32.mrb[22].mxu1 }
 0x6bb   :  { %v1629_v45 = vpop.f32.mrb[23].mxu1 }
 0x6bc   :  { %2959 = vmatprep.mubr.msk.f32.mxu0 %vm339_vm1, %v1629_v45 }
 0x6bd   :  { %2960 = vmatmul.mubr.msk.f32.vlgmr.msra.gmra.mrb[42].mxu0 %vm339_vm1, %v2939_v47 }
 0x6be   :  { %v2942_v22 = vpop.f32.mrb[24].mxu1  ;;  %3126 = vmatpush3.bf16.msra.mxu0 %v4193_v25  ;;  %v3131_v25 = vpack.c.bf16 %v2508_v60, %v2507_v52  ;;  %v3289_v60 = vld [vmem:[%s4353_s0] sm:$0xff] }
 0x6bf   :  { %v1639_v54 = vpop.f32.mrb[25].mxu1  ;;  %3128 = vmatprep.subr.bf16.mxu0 %v3127_v61 }
 0x6c0   :  { %2962 = vmatprep.mubr.msk.f32.mxu0 %vm339_vm1, %v1639_v54 }
 0x6c1   :  { %2963 = vmatmul.mubr.msk.f32.gmra.mrb[44].mxu0 %vm339_vm1, %v2942_v22 }
 0x6c2   :  { %v2945_v15 = vpop.f32.mrb[26].mxu1  ;;  %2969 = vmatprep.mubr.msk.f32.mxu0 %vm339_vm1, %v4181_v8 }
 0x6c3   :  { %v1649_v20 = vpop.f32.mrb[27].mxu1 }
 0x6c5   :  { %2970 = vmatmul.mubr.msk.f32.vlgmr.msra.gmra.mrb[42].mxu0 %vm339_vm1, %v4179_v7 }
 0x6c6   :  { %v2948_v21 = vpop.f32.mrb[28].mxu1  ;;  %2972 = vmatprep.mubr.msk.f32.mxu0 %vm339_vm1, %v4185_v23  ;;  %3130 = vmatpush3.bf16.msra.mxu0 %v3127_v61 }
 0x6c7   :  { %v1659_v19 = vpop.f32.mrb[29].mxu1  ;;  %3132 = vmatprep.subr.bf16.mxu0 %v3131_v25 }
 0x6c9   :  { %2973 = vmatmul.mubr.msk.f32.gmra.mrb[44].mxu0 %vm339_vm1, %v4183_v12 }
 0x6ca   :  { %v2951_v3 = vpop.f32.mrb[30].mxu1  ;;  %2979 = vmatprep.mubr.msk.f32.mxu0 %vm339_vm1, %v1649_v20 }
 0x6cb   :  { %v1669_v30 = vpop.f32.mrb[31].mxu1 }
 0x6cd   :  { %2980 = vmatmul.mubr.msk.f32.vlgmr.msra.gmra.mrb[42].mxu0 %vm339_vm1, %v2945_v15 }
 0x6ce   :  { %v2954_v8 = vpop.f32.mrb[32].mxu1  ;;  %2982 = vmatprep.mubr.msk.f32.mxu0 %vm339_vm1, %v1659_v19  ;;  %3134 = vmatpush3.bf16.msra.mxu0 %v3131_v25 }
 0x6cf   :  { %v1679_v7 = vpop.f32.mrb[33].mxu1 }
 0x6d1   :  { %2983 = vmatmul.mubr.msk.f32.gmra.mrb[44].mxu0 %vm339_vm1, %v2948_v21 }
 0x6d2   :  { %2989 = vmatprep.mubr.msk.f32.mxu0 %vm339_vm1, %v1669_v30  ;;  %v2177_v23 = vpop.f32.mrb[34].mxu1 }
 0x6d3   :  { %v2208_v63 = vmul.f32 0.70710677, %v2177_v23  ;;  %v2179_v59 = vpop.f32.mrb[35].mxu1  ;;  %v2200_v50 = vmul.f32 0.5, %v2177_v23 }
 0x6d4   :  { %v2209_v33 = vmul.f32 0.70710677, %v2179_v59  ;;  %v2201_v49 = vmul.f32 0.5, %v2179_v59  ;;  %v3291_v59 = vld [vmem:[%s4353_s0 + $0x10] sm:$0xff] }
 0x6d5   :  { %3273 = verf.f32 %v2208_v63  ;;  %2990 = vmatmul.mubr.msk.f32.vlgmr.msra.gmra.mrb[42].mxu0 %vm339_vm1, %v2951_v3  ;;  %v3290_v3 = vld [vmem:[%s4353_s0 + $0x8] sm:$0xff] }
 0x6d6   :  { %3275 = verf.f32 %v2209_v33  ;;  %2992 = vmatprep.mubr.msk.f32.mxu0 %vm339_vm1, %v1679_v7  ;;  %v2183_v12 = vpop.f32.mrb[36].mxu1 }
 0x6d7   :  { %v2210_v36 = vmul.f32 0.70710677, %v2183_v12  ;;  %v2185_v38 = vpop.f32.mrb[37].mxu1  ;;  %v2202_v26 = vmul.f32 0.5, %v2183_v12 }
 0x6d8   :  { %v2211_v37 = vmul.f32 0.70710677, %v2185_v38  ;;  %v2203_v56 = vmul.f32 0.5, %v2185_v38 }
 0x6d9   :  { %3277 = verf.f32 %v2210_v36  ;;  %2993 = vmatmul.mubr.msk.f32.gmra.mrb[44].mxu0 %vm339_vm1, %v2954_v8 }
 0x6da   :  { %3279 = verf.f32 %v2211_v37  ;;  %v2189_v39 = vpop.f32.mrb[38].mxu1 }
 0x6db   :  { %v2212_v41 = vmul.f32 0.70710677, %v2189_v39  ;;  %v2191_v18 = vpop.f32.mrb[39].mxu1  ;;  %v2204_v58 = vmul.f32 0.5, %v2189_v39  ;;  %v3292_v39 = vld [vmem:[%s4353_s0 + $0x18] sm:$0xff] }
 0x6dc   :  { %v2213_v16 = vmul.f32 0.70710677, %v2191_v18  ;;  %v2205_v29 = vmul.f32 0.5, %v2191_v18 }
 0x6dd   :  { %3281 = verf.f32 %v2212_v41 }
 0x6de   :  { %3283 = verf.f32 %v2213_v16  ;;  %v2195_v0 = vpop.f32.mrb[40].mxu1 }
 0x6df   :  { %v3274_v4 = vpop.eup %3273  ;;  %v2214_v42 = vmul.f32 0.70710677, %v2195_v0  ;;  %v2197_v43 = vpop.f32.mrb[41].mxu1  ;;  %v2206_v10 = vmul.f32 0.5, %v2195_v0 }
 0x6e0   :  { %v3276_v44 = vpop.eup %3275  ;;  %v2224_v46 = vadd.f32 1.0, %v3274_v4  ;;  %v2215_v48 = vmul.f32 0.70710677, %v2197_v43  ;;  %v2207_v17 = vmul.f32 0.5, %v2197_v43 }
 0x6e1   :  { %v2225_v51 = vadd.f32 1.0, %v3276_v44  ;;  %3285 = verf.f32 %v2214_v42 }
 0x6e2   :  { %3287 = verf.f32 %v2215_v48  ;;  %v2232_v6 = vmul.f32 %v2224_v46, %v2200_v50 }
 0x6e3   :  { %v3278_v53 = vpop.eup %3277  ;;  %v2233_v62 = vmul.f32 %v2225_v51, %v2201_v49 }
 0x6e4   :  { %v3280_v2 = vpop.eup %3279  ;;  %v2226_v55 = vadd.f32 1.0, %v3278_v53 }
 0x6e5   :  { %v2227_v14 = vadd.f32 1.0, %v3280_v2  ;;  %2336 = vmatprep.mubr.f32.mxu1 %v2233_v62 }
 0x6e6   :  { %2337 = vmatmul.mubr.f32.vlgmr.msra.gmra.mrb[42].mxu1 %v2232_v6  ;;  %v2234_v24 = vmul.f32 %v2226_v55, %v2202_v26 }
 0x6e7   :  { %v3282_v27 = vpop.eup %3281  ;;  %v2235_v57 = vmul.f32 %v2227_v14, %v2203_v56 }
 0x6e8   :  { %v3284_v13 = vpop.eup %3283  ;;  %v2228_v28 = vadd.f32 1.0, %v3282_v27 }
 0x6e9   :  { %v2229_v31 = vadd.f32 1.0, %v3284_v13  ;;  %2341 = vmatprep.mubr.f32.mxu1 %v2235_v57 }
 0x6ea   :  { %2342 = vmatmul.mubr.f32.gmra.mrb[44].mxu1 %v2234_v24  ;;  %v2236_v32 = vmul.f32 %v2228_v28, %v2204_v58 }
 0x6eb   :  { %v3286_v1 = vpop.eup %3285  ;;  %v2237_v35 = vmul.f32 %v2229_v31, %v2205_v29 }
 0x6ec   :  { %v3288_v5 = vpop.eup %3287  ;;  %v2230_v9 = vadd.f32 1.0, %v3286_v1 }
 0x6ed   :  { %v2231_v40 = vadd.f32 1.0, %v3288_v5  ;;  %2346 = vmatprep.mubr.f32.mxu1 %v2237_v35 }
 0x6ee   :  { %2347 = vmatmul.mubr.f32.gmra.mrb[46].mxu1 %v2236_v32  ;;  %v2238_v34 = vmul.f32 %v2230_v9, %v2206_v10 }
 0x6ef   :  { %v2239_v11 = vmul.f32 %v2231_v40, %v2207_v17 }
 0x6f1   :  { %2351 = vmatprep.mubr.f32.mxu1 %v2239_v11 }
 0x6f2   :  { %2352 = vmatmul.mubr.f32.gmra.mrb[48].mxu1 %v2238_v34 }
 0x7a8   :  { %v2991_v47 = vpop.f32.mrb[42].mxu0 }
 0x7a9   :  { %v2072_v45 = vpop.f32.mrb[43].mxu0  ;;  %v2358_v30 = vadd.f32 %v3290_v3, %v2991_v47 }
 0x7aa   :  { %v2357_v15 = vadd.f32 %v3289_v60, %v2072_v45 }
 0x7ac   :  { %v2994_v61 = vpop.f32.mrb[44].mxu0 }
 0x7ad   :  { %v2082_v22 = vpop.f32.mrb[45].mxu0  ;;  %v2360_v41 = vadd.f32 %v3292_v39, %v2994_v61 }
 0x7ae   :  { %v2359_v33 = vadd.f32 %v3291_v59, %v2082_v22 }
 0x7b9   :  { %v2709_v54 = vpop.f32.mrb[42].mxu1 }
 0x7ba   :  { %v2710_v52 = vpop.f32.mrb[43].mxu1 }
 0x7bb   :  { %v2711_v20 = vadd.f32 %v2710_v52, %v2709_v54 }
 0x7bd   :  { %v2361_v25 = vadd.f32 %v2711_v20, %v2357_v15  ;;  %v2712_v21 = vpop.f32.mrb[44].mxu1 }
 0x7be   :  { %v2713_v19 = vpop.f32.mrb[45].mxu1 }
 0x7bf   :  { %2365 = vst.msk [vmem:[#allocation2] sm:$0xff] %vm55_vm0, %v2361_v25  ;;  %v2714_v8 = vadd.f32 %v2713_v19, %v2712_v21 }
 0x7c1   :  { %v2362_v7 = vadd.f32 %v2714_v8, %v2358_v30  ;;  %v2715_v23 = vpop.f32.mrb[46].mxu1 }
 0x7c2   :  { %v2716_v63 = vpop.f32.mrb[47].mxu1 }
 0x7c3   :  { %2366 = vst.msk [vmem:[#allocation2 + $0x8] sm:$0xff] %vm55_vm0, %v2362_v7  ;;  %v2717_v12 = vadd.f32 %v2716_v63, %v2715_v23 }
 0x7c5   :  { %v2363_v36 = vadd.f32 %v2717_v12, %v2359_v33  ;;  %v2718_v38 = vpop.f32.mrb[48].mxu1 }
 0x7c6   :  { %v2719_v37 = vpop.f32.mrb[49].mxu1 }
 0x7c7   :  { %2367 = vst.msk [vmem:[#allocation2 + $0x10] sm:$0xff] %vm55_vm0, %v2363_v36  ;;  %v2720_v18 = vadd.f32 %v2719_v37, %v2718_v38 }
 0x7c9   :  { %v2364_v16 = vadd.f32 %v2720_v18, %v2360_v41 }
 0x7cb   :  { %2368 = vst.msk [vmem:[#allocation2 + $0x18] sm:$0xff] %vm55_vm0, %v2364_v16 }
 0x7cc   :  { %3304 = shalt.err (!%p3301_p4)
}
 0x7cd   :  { %s3305_s26 = scalar_lea.hbm %s4368_s15, 512 }
 0x7ce   :  { %p3306_p5 = scmp.ne.s32.totalorder %s4368_s15, %s3305_s26  ;;  %p3309_p6 = scmp.lt.u32.totalorder %s3305_s26, %s4368_s15 }
 0x7d0   :  { %p3311_p7 = pnand %p3309_p6, %p3306_p5 }
 0x7d2   :  { %3314 = shalt.err (!%p3311_p7)
}
 0x7d3   :  { %s3319_s10 = smov 128   ;;  %s3320_s30 = smov 8  }
 0x7d4   :  { %2380 = dma.vmem_to_hbm [thread:$0]  %s2375_s7, 512, %s4368_s15, [#allocation3], %s3319_s10, %s3319_s10, %s3320_s30  }
 0x7d5   :  { %3315 = dma.done.wait [#allocation3], 512  }
 0x7d6   :  { %3316 = vsyncadd [#allocation3], 4294966784 }
 0x7d7   :  { %2384 = vsyncpa [#allocation3], 1 }

</bundles_post_ra>
